<compile_context>
chip_gen: v7x
topology: tpu7x:2x2x1
jax: 0.10.0
libtpu: 0.0.40
codegen_flags: <defaults>
</compile_context>

<pallas_src>
import math
from functools import partial

import numpy as np
import jax
import jax.numpy as jnp
from jax.experimental import pallas as pl
from jax.experimental.pallas import tpu as pltpu


def synthesizer_attention_kernel(xq_ref, w1t_ref, b1_ref, wvt_ref, bv_ref,
                                 w2t_ref, wpt_ref, bp_ref, o_ref,
                                 v_scr, kq_scr, m_scr, l_scr, acc_scr, y_scr,
                                 *, n_head, head_dim, q_tile):
    """One grid step = (batch element, query tile). All heads handled inside."""
    hs, tq = head_dim, q_tile
    tk = tq                       # kv tile size == query tile size (aligned tiles)
    M = n_head * tq               # head-major row count
    cdt = v_scr.dtype             # MXU input dtype (follows x.dtype)
    qi = pl.program_id(1)

    xq = xq_ref[0]                                                     # (tq, C)

    # ---- v for this tile's rows only (incremental; exact under causality).
    v_tile = (jnp.dot(xq, wvt_ref[...], preferred_element_type=jnp.float32)
              + bv_ref[...])                                           # (tq, C) f32
    row0 = pl.multiple_of(qi * tq, tq)
    v_scr[pl.ds(row0, tq), :] = v_tile.astype(cdt)

    # ---- kq = relu(x @ W1^T + b1), staged head-major with a trailing ones
    #      column (the ones column picks up b2, which is folded into w2).
    kq = jnp.maximum(
        jnp.dot(xq, w1t_ref[...], preferred_element_type=jnp.float32)
        + b1_ref[...], 0.0).astype(cdt)                                # (tq, C)
    for h in range(n_head):
        kq_scr[h * tq:(h + 1) * tq, 0:hs] = kq[:, h * hs:(h + 1) * hs]
    kq_scr[:, hs:hs + 1] = jnp.ones((M, 1), cdt)

    # ---- online-softmax running state (per head-major row).
    m_scr[...] = jnp.full_like(m_scr, -1e30)
    l_scr[...] = jnp.zeros_like(l_scr)
    acc_scr[...] = jnp.zeros_like(acc_scr)

    def kv_step(kj, masked):
        """Process kv tile kj for every head at once (flash-style update)."""
        start = pl.multiple_of(kj * tk, tk)
        w2_t = w2t_ref[pl.ds(start, tk), :]                            # (tk, hs+1)
        # Head-batched score GEMM (bias included via the augmented row of w2).
        s = jax.lax.dot_general(kq_scr[...], w2_t,
                                (((1,), (1,)), ((), ())),
                                preferred_element_type=jnp.float32)    # (M, tk)
        if masked:
            # Diagonal kv tile: causal mask (query row of score row r is r % tq).
            rows = jax.lax.broadcasted_iota(jnp.int32, (M, tk), 0) % tq
            cols = jax.lax.broadcasted_iota(jnp.int32, (M, tk), 1)
            s = jnp.where(cols > rows, -1e30, s)

        m_prev = m_scr[...]
        m_new = jnp.maximum(m_prev, jnp.max(s, axis=-1, keepdims=True))
        alpha = jnp.exp(m_prev - m_new)
        # TODO(synk): on v6e/v7x, if EUP-bound, do this exp in bf16 (not on v5e).
        p = jnp.exp(s - m_new)                                         # (M, tk) f32
        l_scr[...] = alpha * l_scr[...] + jnp.sum(p, axis=-1, keepdims=True)
        m_scr[...] = m_new

        p_c = p.astype(cdt)
        v_t = v_scr[pl.ds(start, tk), :]                               # (tk, C)
        # Per-head p @ v_h (different v columns per head, so inherently per head).
        # TODO(synk): when hs < 128, head-pair block-diagonal p@v would widen the
        # MXU output to 128+ lanes at 2x MAC waste; left as a follow-up sweep.
        for h in range(n_head):
            r0, c0 = h * tq, h * hs
            acc_scr[r0:r0 + tq, :] = (
                alpha[r0:r0 + tq, :] * acc_scr[r0:r0 + tq, :]
                + jnp.dot(p_c[r0:r0 + tq, :], v_t[:, c0:c0 + hs],
                          preferred_element_type=jnp.float32))

    # Strictly-below-diagonal kv tiles need no masking; diagonal tile is last.
    @pl.loop(0, qi)
    def _(kj):
        kv_step(kj, masked=False)
    kv_step(qi, masked=True)

    # ---- normalize, un-interleave heads, deferred output projection.
    y_hm = acc_scr[...] * pl.reciprocal(l_scr[...], approx=True)       # (M, hs) f32
    for h in range(n_head):
        y_scr[:, h * hs:(h + 1) * hs] = y_hm[h * tq:(h + 1) * tq, :].astype(cdt)
    out = (jnp.dot(y_scr[...], wpt_ref[...], preferred_element_type=jnp.float32)
           + bp_ref[...])
    # attn_drop / resid_drop: identity (eval mode)
    o_ref[0] = out.astype(o_ref.dtype)


def _pad_bytes(shape2d, itemsize):
    """(8,128)-padded VMEM footprint of a 2-D buffer."""
    r, c = shape2d
    return ((r + 7) // 8 * 8) * ((c + 127) // 128 * 128) * itemsize


def synthesizer_attention(x, params, *, n_head, block_size, q_tile=128):
    B, T, C = x.shape
    assert C % n_head == 0
    assert T <= block_size - 1, "SynthesizerAttention requires T <= block_size - 1"
    hs = C // n_head
    w1, b1, wv, bv, w2, b2, wp, bp = params

    # TODO(synk): sweep q_tile (128 -> 256 -> 512) per generation against the
    # VMEM budget (64 MiB on v7x vs 128 MiB on v5e/v6e).
    tq = min(q_tile, T)
    assert T % tq == 0, "T must be divisible by the query tile"
    nq = T // tq
    cdt = x.dtype                      # MXU input dtype (f32 or bf16)
    M = n_head * tq

    # Pre-transpose Linear weights to contraction-major (in, out): no in-kernel
    # transposes.  Fold b2 into w2 as an extra contraction row ([w2; b2]) and
    # store it key-major (T, hs+1) so kv-tile slicing is along sublanes.
    w1_t = jnp.asarray(w1.T, dtype=cdt)
    wv_t = jnp.asarray(wv.T, dtype=cdt)
    wp_t = jnp.asarray(wp.T, dtype=cdt)
    w2_aug_t = jnp.asarray(
        jnp.concatenate([w2[:, :T], b2[:, :T]], axis=0).T, dtype=cdt)   # (T, hs+1)
    b1_r = jnp.asarray(b1, dtype=jnp.float32)
    bv_r = jnp.asarray(bv, dtype=jnp.float32)
    bp_r = jnp.asarray(bp, dtype=jnp.float32)

    kernel = partial(synthesizer_attention_kernel,
                     n_head=n_head, head_dim=hs, q_tile=tq)

    # Explicit VMEM budget: single-buffered weights + persistent scratch +
    # double-buffered x/out tiles + headroom for in-kernel f32 temporaries.
    isz = jnp.dtype(cdt).itemsize
    est = (3 * _pad_bytes((C, C), isz)            # W1^T, Wv^T, Wp^T (single copy)
           + _pad_bytes((T, hs + 1), isz)         # [w2; b2]^T
           + 3 * _pad_bytes((1, C), 4)            # biases
           + _pad_bytes((T, C), isz)              # v scratch
           + _pad_bytes((M, hs + 1), isz)         # head-major kq scratch
           + 2 * _pad_bytes((M, 1), 4)            # m, l
           + _pad_bytes((M, hs), 4)               # acc
           + _pad_bytes((tq, C), isz)             # y scratch
           + 4 * _pad_bytes((tq, C), isz)         # double-buffered x in / out
           + 2 * (_pad_bytes((M, tq), 4) + _pad_bytes((tq, C), 4)))  # temporaries
    vmem_limit = int(min(max(est * 5 // 4 + (4 << 20), 32 << 20), 96 << 20))

    vmem = pltpu.MemorySpace.VMEM
    return pl.pallas_call(
        kernel,
        out_shape=jax.ShapeDtypeStruct((B, T, C), x.dtype),
        grid=(B, nq),
        in_specs=[
            pl.BlockSpec((1, tq, C), lambda b, q: (b, q, 0)),  # x (query tile)
            pl.BlockSpec(memory_space=vmem),                   # W1^T   (single copy)
            pl.BlockSpec(memory_space=vmem),                   # b1
            pl.BlockSpec(memory_space=vmem),                   # Wv^T
            pl.BlockSpec(memory_space=vmem),                   # bv
            pl.BlockSpec(memory_space=vmem),                   # [w2; b2]^T
            pl.BlockSpec(memory_space=vmem),                   # Wp^T
            pl.BlockSpec(memory_space=vmem),                   # bp
        ],
        out_specs=pl.BlockSpec((1, tq, C), lambda b, q: (b, q, 0)),
        scratch_shapes=[
            pltpu.VMEM((T, C), cdt),                # v rows written so far (per batch)
            pltpu.VMEM((M, hs + 1), cdt),           # head-major kq (+ ones column)
            pltpu.VMEM((M, 1), jnp.float32),        # online-softmax running max
            pltpu.VMEM((M, 1), jnp.float32),        # online-softmax running sum
            pltpu.VMEM((M, hs), jnp.float32),       # per-head output accumulator
            pltpu.VMEM((tq, C), cdt),               # interleaved y before projection
        ],
        compiler_params=pltpu.CompilerParams(
            # batch axis parallel (2 TCs on v7x); the query-tile axis MUST stay
            # sequential ("arbitrary"): v_scr is filled incrementally tile by
            # tile and reused by later tiles of the same batch element.
            # TODO(synk): for B odd/small on v7x, split the query range per core
            # instead (recompute the small v prefix per core) to avoid idling a TC.
            dimension_semantics=("parallel", "arbitrary"),
            vmem_limit_bytes=vmem_limit),
    )(x, w1_t, b1_r, wv_t, bv_r, w2_aug_t, wp_t, bp_r)


def reference_jax(x, params, n_head):
    """Pure-JAX re-implementation of the PyTorch forward (eval mode)."""
    w1, b1, wv, bv, w2, b2, wp, bp = params
    B, T, C = x.shape
    hs = C // n_head
    v = (x @ wv.T + bv[0]).reshape(B, T, n_head, hs).transpose(0, 2, 1, 3)
    kq = jax.nn.relu(x @ w1.T + b1[0]).reshape(B, T, n_head, hs).transpose(0, 2, 1, 3)
    attn = jnp.einsum('bhtd,de->bhte', kq, w2[:, :T]) + b2[0, :T]
    mask = jnp.tril(jnp.ones((T, T), dtype=bool))
    attn = jnp.where(mask, attn, -jnp.inf)
    attn = jax.nn.softmax(attn, axis=-1)
    y = attn @ v
    y = y.transpose(0, 2, 1, 3).reshape(B, T, C)
    return y @ wp.T + bp[0]


def init_params(key, n_embd, n_head, block_size):
    """Deterministic init mimicking the module's __init__ (PyTorch Linear default + w2 uniform)."""
    hs = n_embd // n_head
    ks = jax.random.split(key, 7)
    bound = 1.0 / math.sqrt(n_embd)
    w1 = jax.random.uniform(ks[0], (n_embd, n_embd), jnp.float32, -bound, bound)
    b1 = jax.random.uniform(ks[1], (1, n_embd), jnp.float32, -bound, bound)
    wv = jax.random.uniform(ks[2], (n_embd, n_embd), jnp.float32, -bound, bound)
    bv = jax.random.uniform(ks[3], (1, n_embd), jnp.float32, -bound, bound)
    w2 = jax.random.uniform(ks[4], (hs, block_size - 1), jnp.float32, -0.001, 0.001)
    b2 = jnp.zeros((1, block_size - 1), jnp.float32)
    wp = jax.random.uniform(ks[5], (n_embd, n_embd), jnp.float32, -bound, bound)
    bp = jax.random.uniform(ks[6], (1, n_embd), jnp.float32, -bound, bound)
    return (w1, b1, wv, bv, w2, b2, wp, bp)


if __name__ == "__main__":
    # Small config: B=2, T=8, C=32 (n_embd), n_head=4, block_size=16 (T <= block_size-1)
    B, T, C = 2, 8, 32
    n_head, block_size = 4, 16

    key = jax.random.PRNGKey(0)
    kx, kp = jax.random.split(key)
    x = jax.random.normal(kx, (B, T, C), dtype=jnp.float32)
    params = init_params(kp, C, n_head, block_size)

    ref = jax.block_until_ready(reference_jax(x, params, n_head))

    # f32 path: structural correctness (causal kv tiling, online softmax,
    # head-major staging, incremental v, output projection).
    out_f32 = jax.block_until_ready(
        synthesizer_attention(x, params, n_head=n_head, block_size=block_size))
    np.testing.assert_allclose(np.asarray(out_f32), np.asarray(ref),
                               rtol=2e-2, atol=2e-2)

    # bf16 path: the performance configuration (bf16 MXU inputs, f32 accumulation).
    out_bf16 = jax.block_until_ready(
        synthesizer_attention(x.astype(jnp.bfloat16), params,
                              n_head=n_head, block_size=block_size))
    np.testing.assert_allclose(np.asarray(out_bf16.astype(jnp.float32)),
                               np.asarray(ref), rtol=6e-2, atol=6e-2)

    print("KERNEL_OK")
</pallas_src>

<mosaic_0001>
module attributes {stable_mosaic.version = 11 : i64} {
  func.func @synthesizer_attention_kernel(%arg0: i32, %arg1: i32, %arg2: memref<1x8x32xf32, #tpu.memory_space<vmem>>, %arg3: memref<32x32xf32, #tpu.memory_space<vmem>>, %arg4: memref<1x32xf32, #tpu.memory_space<vmem>>, %arg5: memref<32x32xf32, #tpu.memory_space<vmem>>, %arg6: memref<1x32xf32, #tpu.memory_space<vmem>>, %arg7: memref<8x9xf32, #tpu.memory_space<vmem>>, %arg8: memref<32x32xf32, #tpu.memory_space<vmem>>, %arg9: memref<1x32xf32, #tpu.memory_space<vmem>>, %arg10: memref<1x8x32xf32, #tpu.memory_space<vmem>>, %arg11: memref<8x32xf32, #tpu.memory_space<vmem>>, %arg12: memref<32x9xf32, #tpu.memory_space<vmem>>, %arg13: memref<32x1xf32, #tpu.memory_space<vmem>>, %arg14: memref<32x1xf32, #tpu.memory_space<vmem>>, %arg15: memref<32x8xf32, #tpu.memory_space<vmem>>, %arg16: memref<8x32xf32, #tpu.memory_space<vmem>>) attributes {dimension_semantics = [#tpu.dimension_semantics<parallel>, #tpu.dimension_semantics<arbitrary>], iteration_bounds = array<i64: 2, 1>, scalar_prefetch = 0 : i64, scratch_operands = 6 : i64, tpu.core_type = #tpu.core_type<tc>, window_params = [{transform_indices = @transform_0, window_bounds = array<i64: 1, 8, 32>}, {pipeline_mode = #tpu.pipeline_mode<synchronous>, transform_indices = @transform_1, window_bounds = array<i64: 32, 32>}, {pipeline_mode = #tpu.pipeline_mode<synchronous>, transform_indices = @transform_2, window_bounds = array<i64: 1, 32>}, {pipeline_mode = #tpu.pipeline_mode<synchronous>, transform_indices = @transform_3, window_bounds = array<i64: 32, 32>}, {pipeline_mode = #tpu.pipeline_mode<synchronous>, transform_indices = @transform_4, window_bounds = array<i64: 1, 32>}, {pipeline_mode = #tpu.pipeline_mode<synchronous>, transform_indices = @transform_5, window_bounds = array<i64: 8, 9>}, {pipeline_mode = #tpu.pipeline_mode<synchronous>, transform_indices = @transform_6, window_bounds = array<i64: 32, 32>}, {pipeline_mode = #tpu.pipeline_mode<synchronous>, transform_indices = @transform_7, window_bounds = array<i64: 1, 32>}, {transform_indices = @transform_8, window_bounds = array<i64: 1, 8, 32>}]} {
    %c0 = arith.constant 0 : index
    %c0_0 = arith.constant 0 : index
    %c0_1 = arith.constant 0 : index
    %0 = vector.load %arg2[%c0, %c0_0, %c0_1] : memref<1x8x32xf32, #tpu.memory_space<vmem>>, vector<1x8x32xf32>
    %1 = vector.shape_cast %0 : vector<1x8x32xf32> to vector<8x32xf32>
    %c0_2 = arith.constant 0 : index
    %c0_3 = arith.constant 0 : index
    %2 = vector.load %arg5[%c0_2, %c0_3] : memref<32x32xf32, #tpu.memory_space<vmem>>, vector<32x32xf32>
    %cst = arith.constant dense<0.000000e+00> : vector<8x32xf32>
    %3 = tpu.matmul %1, %2, %cst {dimension_numbers = #tpu.dot_dimension_numbers<[1], [0], [0], [1], [0, 0, 1, 1], [], []>} : vector<8x32xf32>, vector<32x32xf32>, vector<8x32xf32> -> vector<8x32xf32>
    %c0_4 = arith.constant 0 : index
    %c0_5 = arith.constant 0 : index
    %4 = vector.load %arg6[%c0_4, %c0_5] : memref<1x32xf32, #tpu.memory_space<vmem>>, vector<1x32xf32>
    %5 = vector.broadcast %4 : vector<1x32xf32> to vector<8x32xf32>
    %6 = arith.addf %3, %5 : vector<8x32xf32>
    %c8_i32 = arith.constant 8 : i32
    %7 = arith.muli %arg1, %c8_i32 : i32
    %8 = tpu.assume_multiple %7, 8 : i32
    %9 = arith.index_cast %8 : i32 to index
    %c0_6 = arith.constant 0 : index
    %10 = vector.load %arg11[%9, %c0_6] : memref<8x32xf32, #tpu.memory_space<vmem>>, vector<8x32xf32>
    tpu.vector_store %arg11[%9, %c0_6], %6 {strides = array<i32>} : memref<8x32xf32, #tpu.memory_space<vmem>>, vector<8x32xf32>,
    %c0_7 = arith.constant 0 : index
    %c0_8 = arith.constant 0 : index
    %11 = vector.load %arg3[%c0_7, %c0_8] : memref<32x32xf32, #tpu.memory_space<vmem>>, vector<32x32xf32>
    %cst_9 = arith.constant dense<0.000000e+00> : vector<8x32xf32>
    %12 = tpu.matmul %1, %11, %cst_9 {dimension_numbers = #tpu.dot_dimension_numbers<[1], [0], [0], [1], [0, 0, 1, 1], [], []>} : vector<8x32xf32>, vector<32x32xf32>, vector<8x32xf32> -> vector<8x32xf32>
    %c0_10 = arith.constant 0 : index
    %c0_11 = arith.constant 0 : index
    %13 = vector.load %arg4[%c0_10, %c0_11] : memref<1x32xf32, #tpu.memory_space<vmem>>, vector<1x32xf32>
    %14 = vector.broadcast %13 : vector<1x32xf32> to vector<8x32xf32>
    %15 = arith.addf %12, %14 : vector<8x32xf32>
    %cst_12 = arith.constant 0.000000e+00 : f32
    %16 = vector.broadcast %cst_12 : f32 to vector<8x32xf32>
    %17 = arith.maximumf %15, %16 : vector<8x32xf32>
    %18 = vector.extract_strided_slice %17 {offsets = [0, 0], sizes = [8, 8], strides = [1, 1]} : vector<8x32xf32> to vector<8x8xf32>
    %c0_13 = arith.constant 0 : index
    %c0_14 = arith.constant 0 : index
    %19 = vector.load %arg12[%c0_13, %c0_14] : memref<32x9xf32, #tpu.memory_space<vmem>>, vector<8x8xf32>
    tpu.vector_store %arg12[%c0_13, %c0_14], %18 {strides = array<i32>} : memref<32x9xf32, #tpu.memory_space<vmem>>, vector<8x8xf32>,
    %20 = vector.extract_strided_slice %17 {offsets = [0, 8], sizes = [8, 8], strides = [1, 1]} : vector<8x32xf32> to vector<8x8xf32>
    %c8 = arith.constant 8 : index
    %c0_15 = arith.constant 0 : index
    %21 = vector.load %arg12[%c8, %c0_15] : memref<32x9xf32, #tpu.memory_space<vmem>>, vector<8x8xf32>
    tpu.vector_store %arg12[%c8, %c0_15], %20 {strides = array<i32>} : memref<32x9xf32, #tpu.memory_space<vmem>>, vector<8x8xf32>,
    %22 = vector.extract_strided_slice %17 {offsets = [0, 16], sizes = [8, 8], strides = [1, 1]} : vector<8x32xf32> to vector<8x8xf32>
    %c16 = arith.constant 16 : index
    %c0_16 = arith.constant 0 : index
    %23 = vector.load %arg12[%c16, %c0_16] : memref<32x9xf32, #tpu.memory_space<vmem>>, vector<8x8xf32>
    tpu.vector_store %arg12[%c16, %c0_16], %22 {strides = array<i32>} : memref<32x9xf32, #tpu.memory_space<vmem>>, vector<8x8xf32>,
    %24 = vector.extract_strided_slice %17 {offsets = [0, 24], sizes = [8, 8], strides = [1, 1]} : vector<8x32xf32> to vector<8x8xf32>
    %c24 = arith.constant 24 : index
    %c0_17 = arith.constant 0 : index
    %25 = vector.load %arg12[%c24, %c0_17] : memref<32x9xf32, #tpu.memory_space<vmem>>, vector<8x8xf32>
    tpu.vector_store %arg12[%c24, %c0_17], %24 {strides = array<i32>} : memref<32x9xf32, #tpu.memory_space<vmem>>, vector<8x8xf32>,
    %cst_18 = arith.constant 1.000000e+00 : f32
    %26 = vector.broadcast %cst_18 : f32 to vector<32x1xf32>
    %c0_19 = arith.constant 0 : index
    %c8_20 = arith.constant 8 : index
    %27 = vector.load %arg12[%c0_19, %c8_20] : memref<32x9xf32, #tpu.memory_space<vmem>>, vector<32x1xf32>
    tpu.vector_store %arg12[%c0_19, %c8_20], %26 {strides = array<i32>} : memref<32x9xf32, #tpu.memory_space<vmem>>, vector<32x1xf32>,
    %cst_21 = arith.constant -1.000000e+30 : f32
    %28 = vector.broadcast %cst_21 : f32 to vector<32x1xf32>
    %c0_22 = arith.constant 0 : index
    %c0_23 = arith.constant 0 : index
    %29 = vector.load %arg13[%c0_22, %c0_23] : memref<32x1xf32, #tpu.memory_space<vmem>>, vector<32x1xf32>
    tpu.vector_store %arg13[%c0_22, %c0_23], %28 {strides = array<i32>} : memref<32x1xf32, #tpu.memory_space<vmem>>, vector<32x1xf32>,
    %cst_24 = arith.constant 0.000000e+00 : f32
    %30 = vector.broadcast %cst_24 : f32 to vector<32x1xf32>
    %c0_25 = arith.constant 0 : index
    %c0_26 = arith.constant 0 : index
    %31 = vector.load %arg14[%c0_25, %c0_26] : memref<32x1xf32, #tpu.memory_space<vmem>>, vector<32x1xf32>
    tpu.vector_store %arg14[%c0_25, %c0_26], %30 {strides = array<i32>} : memref<32x1xf32, #tpu.memory_space<vmem>>, vector<32x1xf32>,
    %cst_27 = arith.constant 0.000000e+00 : f32
    %32 = vector.broadcast %cst_27 : f32 to vector<32x8xf32>
    %c0_28 = arith.constant 0 : index
    %c0_29 = arith.constant 0 : index
    %33 = vector.load %arg15[%c0_28, %c0_29] : memref<32x8xf32, #tpu.memory_space<vmem>>, vector<32x8xf32>
    tpu.vector_store %arg15[%c0_28, %c0_29], %32 {strides = array<i32>} : memref<32x8xf32, #tpu.memory_space<vmem>>, vector<32x8xf32>,
    %c0_i32 = arith.constant 0 : i32
    %34 = arith.subi %arg1, %c0_i32 : i32
    %c1_i32 = arith.constant 1 : i32
    %c1_i32_30 = arith.constant 1 : i32
    %35 = arith.subi %c1_i32, %c1_i32_30 : i32
    %36 = arith.addi %34, %35 : i32
    %c1_i32_31 = arith.constant 1 : i32
    %37 = arith.divsi %36, %c1_i32_31 : i32
    %c1_i32_32 = arith.constant 1 : i32
    %c0_i32_33 = arith.constant 0 : i32
    %c0_i32_34 = arith.constant 0 : i32
    %38 = arith.subi %37, %c0_i32_34 : i32
    %39 = arith.addi %c0_i32_34, %38 : i32
    %c1_i32_35 = arith.constant 1 : i32
    scf.for %arg17 = %c0_i32_34 to %39 step %c1_i32_35  : i32 {
      %143 = arith.muli %arg17, %c1_i32_32 : i32
      %144 = arith.addi %c0_i32_33, %143 : i32
      %c8_i32_101 = arith.constant 8 : i32
      %145 = arith.muli %144, %c8_i32_101 : i32
      %146 = tpu.assume_multiple %145, 8 : i32
      %147 = arith.index_cast %146 : i32 to index
      %c0_102 = arith.constant 0 : index
      %148 = vector.load %arg7[%147, %c0_102] : memref<8x9xf32, #tpu.memory_space<vmem>>, vector<8x9xf32>
      %c0_103 = arith.constant 0 : index
      %c0_104 = arith.constant 0 : index
      %149 = vector.load %arg12[%c0_103, %c0_104] : memref<32x9xf32, #tpu.memory_space<vmem>>, vector<32x9xf32>
      %cst_105 = arith.constant dense<0.000000e+00> : vector<32x8xf32>
      %150 = tpu.matmul %149, %148, %cst_105 {dimension_numbers = #tpu.dot_dimension_numbers<[1], [1], [0], [0], [0, 0, 1, 0], [], []>} : vector<32x9xf32>, vector<8x9xf32>, vector<32x8xf32> -> vector<32x8xf32>
      %c0_106 = arith.constant 0 : index
      %c0_107 = arith.constant 0 : index
      %151 = vector.load %arg13[%c0_106, %c0_107] : memref<32x1xf32, #tpu.memory_space<vmem>>, vector<32x1xf32>
      %cst_108 = arith.constant dense<0xFF800000> : vector<32xf32>
      %152 = vector.multi_reduction <maximumf>, %150, %cst_108 [1] : vector<32x8xf32> to vector<32xf32>
      %153 = vector.shape_cast %152 : vector<32xf32> to vector<32x1xf32>
      %154 = arith.maximumf %151, %153 : vector<32x1xf32>
      %155 = arith.subf %151, %154 : vector<32x1xf32>
      %156 = math.exp %155 : vector<32x1xf32>
      %157 = vector.broadcast %154 : vector<32x1xf32> to vector<32x8xf32>
      %158 = arith.subf %150, %157 : vector<32x8xf32>
      %159 = math.exp %158 : vector<32x8xf32>
      %c0_109 = arith.constant 0 : index
      %c0_110 = arith.constant 0 : index
      %160 = vector.load %arg14[%c0_109, %c0_110] : memref<32x1xf32, #tpu.memory_space<vmem>>, vector<32x1xf32>
      %161 = arith.mulf %156, %160 : vector<32x1xf32>
      %cst_111 = arith.constant dense<0.000000e+00> : vector<32xf32>
      %162 = vector.multi_reduction <add>, %159, %cst_111 [1] : vector<32x8xf32> to vector<32xf32>
      %163 = vector.shape_cast %162 : vector<32xf32> to vector<32x1xf32>
      %164 = arith.addf %161, %163 : vector<32x1xf32>
      %c0_112 = arith.constant 0 : index
      %c0_113 = arith.constant 0 : index
      %165 = vector.load %arg14[%c0_112, %c0_113] : memref<32x1xf32, #tpu.memory_space<vmem>>, vector<32x1xf32>
      tpu.vector_store %arg14[%c0_112, %c0_113], %164 {strides = array<i32>} : memref<32x1xf32, #tpu.memory_space<vmem>>, vector<32x1xf32>,
      %c0_114 = arith.constant 0 : index
      %c0_115 = arith.constant 0 : index
      %166 = vector.load %arg13[%c0_114, %c0_115] : memref<32x1xf32, #tpu.memory_space<vmem>>, vector<32x1xf32>
      tpu.vector_store %arg13[%c0_114, %c0_115], %154 {strides = array<i32>} : memref<32x1xf32, #tpu.memory_space<vmem>>, vector<32x1xf32>,
      %167 = arith.index_cast %146 : i32 to index
      %c0_116 = arith.constant 0 : index
      %168 = vector.load %arg11[%167, %c0_116] : memref<8x32xf32, #tpu.memory_space<vmem>>, vector<8x32xf32>
      %169 = vector.extract_strided_slice %156 {offsets = [0, 0], sizes = [8, 1], strides = [1, 1]} : vector<32x1xf32> to vector<8x1xf32>
      %c0_117 = arith.constant 0 : index
      %c0_118 = arith.constant 0 : index
      %170 = vector.load %arg15[%c0_117, %c0_118] : memref<32x8xf32, #tpu.memory_space<vmem>>, vector<8x8xf32>
      %171 = vector.broadcast %169 : vector<8x1xf32> to vector<8x8xf32>
      %172 = arith.mulf %171, %170 : vector<8x8xf32>
      %173 = vector.extract_strided_slice %159 {offsets = [0, 0], sizes = [8, 8], strides = [1, 1]} : vector<32x8xf32> to vector<8x8xf32>
      %174 = vector.extract_strided_slice %168 {offsets = [0, 0], sizes = [8, 8], strides = [1, 1]} : vector<8x32xf32> to vector<8x8xf32>
      %cst_119 = arith.constant dense<0.000000e+00> : vector<8x8xf32>
      %175 = tpu.matmul %173, %174, %cst_119 {dimension_numbers = #tpu.dot_dimension_numbers<[1], [0], [0], [1], [0, 0, 1, 1], [], []>} : vector<8x8xf32>, vector<8x8xf32>, vector<8x8xf32> -> vector<8x8xf32>
      %176 = arith.addf %172, %175 : vector<8x8xf32>
      %c0_120 = arith.constant 0 : index
      %c0_121 = arith.constant 0 : index
      %177 = vector.load %arg15[%c0_120, %c0_121] : memref<32x8xf32, #tpu.memory_space<vmem>>, vector<8x8xf32>
      tpu.vector_store %arg15[%c0_120, %c0_121], %176 {strides = array<i32>} : memref<32x8xf32, #tpu.memory_space<vmem>>, vector<8x8xf32>,
      %178 = vector.extract_strided_slice %156 {offsets = [8, 0], sizes = [8, 1], strides = [1, 1]} : vector<32x1xf32> to vector<8x1xf32>
      %c8_122 = arith.constant 8 : index
      %c0_123 = arith.constant 0 : index
      %179 = vector.load %arg15[%c8_122, %c0_123] : memref<32x8xf32, #tpu.memory_space<vmem>>, vector<8x8xf32>
      %180 = vector.broadcast %178 : vector<8x1xf32> to vector<8x8xf32>
      %181 = arith.mulf %180, %179 : vector<8x8xf32>
      %182 = vector.extract_strided_slice %159 {offsets = [8, 0], sizes = [8, 8], strides = [1, 1]} : vector<32x8xf32> to vector<8x8xf32>
      %183 = vector.extract_strided_slice %168 {offsets = [0, 8], sizes = [8, 8], strides = [1, 1]} : vector<8x32xf32> to vector<8x8xf32>
      %cst_124 = arith.constant dense<0.000000e+00> : vector<8x8xf32>
      %184 = tpu.matmul %182, %183, %cst_124 {dimension_numbers = #tpu.dot_dimension_numbers<[1], [0], [0], [1], [0, 0, 1, 1], [], []>} : vector<8x8xf32>, vector<8x8xf32>, vector<8x8xf32> -> vector<8x8xf32>
      %185 = arith.addf %181, %184 : vector<8x8xf32>
      %c8_125 = arith.constant 8 : index
      %c0_126 = arith.constant 0 : index
      %186 = vector.load %arg15[%c8_125, %c0_126] : memref<32x8xf32, #tpu.memory_space<vmem>>, vector<8x8xf32>
      tpu.vector_store %arg15[%c8_125, %c0_126], %185 {strides = array<i32>} : memref<32x8xf32, #tpu.memory_space<vmem>>, vector<8x8xf32>,
      %187 = vector.extract_strided_slice %156 {offsets = [16, 0], sizes = [8, 1], strides = [1, 1]} : vector<32x1xf32> to vector<8x1xf32>
      %c16_127 = arith.constant 16 : index
      %c0_128 = arith.constant 0 : index
      %188 = vector.load %arg15[%c16_127, %c0_128] : memref<32x8xf32, #tpu.memory_space<vmem>>, vector<8x8xf32>
      %189 = vector.broadcast %187 : vector<8x1xf32> to vector<8x8xf32>
      %190 = arith.mulf %189, %188 : vector<8x8xf32>
      %191 = vector.extract_strided_slice %159 {offsets = [16, 0], sizes = [8, 8], strides = [1, 1]} : vector<32x8xf32> to vector<8x8xf32>
      %192 = vector.extract_strided_slice %168 {offsets = [0, 16], sizes = [8, 8], strides = [1, 1]} : vector<8x32xf32> to vector<8x8xf32>
      %cst_129 = arith.constant dense<0.000000e+00> : vector<8x8xf32>
      %193 = tpu.matmul %191, %192, %cst_129 {dimension_numbers = #tpu.dot_dimension_numbers<[1], [0], [0], [1], [0, 0, 1, 1], [], []>} : vector<8x8xf32>, vector<8x8xf32>, vector<8x8xf32> -> vector<8x8xf32>
      %194 = arith.addf %190, %193 : vector<8x8xf32>
      %c16_130 = arith.constant 16 : index
      %c0_131 = arith.constant 0 : index
      %195 = vector.load %arg15[%c16_130, %c0_131] : memref<32x8xf32, #tpu.memory_space<vmem>>, vector<8x8xf32>
      tpu.vector_store %arg15[%c16_130, %c0_131], %194 {strides = array<i32>} : memref<32x8xf32, #tpu.memory_space<vmem>>, vector<8x8xf32>,
      %196 = vector.extract_strided_slice %156 {offsets = [24, 0], sizes = [8, 1], strides = [1, 1]} : vector<32x1xf32> to vector<8x1xf32>
      %c24_132 = arith.constant 24 : index
      %c0_133 = arith.constant 0 : index
      %197 = vector.load %arg15[%c24_132, %c0_133] : memref<32x8xf32, #tpu.memory_space<vmem>>, vector<8x8xf32>
      %198 = vector.broadcast %196 : vector<8x1xf32> to vector<8x8xf32>
      %199 = arith.mulf %198, %197 : vector<8x8xf32>
      %200 = vector.extract_strided_slice %159 {offsets = [24, 0], sizes = [8, 8], strides = [1, 1]} : vector<32x8xf32> to vector<8x8xf32>
      %201 = vector.extract_strided_slice %168 {offsets = [0, 24], sizes = [8, 8], strides = [1, 1]} : vector<8x32xf32> to vector<8x8xf32>
      %cst_134 = arith.constant dense<0.000000e+00> : vector<8x8xf32>
      %202 = tpu.matmul %200, %201, %cst_134 {dimension_numbers = #tpu.dot_dimension_numbers<[1], [0], [0], [1], [0, 0, 1, 1], [], []>} : vector<8x8xf32>, vector<8x8xf32>, vector<8x8xf32> -> vector<8x8xf32>
      %203 = arith.addf %199, %202 : vector<8x8xf32>
      %c24_135 = arith.constant 24 : index
      %c0_136 = arith.constant 0 : index
      %204 = vector.load %arg15[%c24_135, %c0_136] : memref<32x8xf32, #tpu.memory_space<vmem>>, vector<8x8xf32>
      tpu.vector_store %arg15[%c24_135, %c0_136], %203 {strides = array<i32>} : memref<32x8xf32, #tpu.memory_space<vmem>>, vector<8x8xf32>,
    }
    %c8_i32_36 = arith.constant 8 : i32
    %40 = arith.muli %arg1, %c8_i32_36 : i32
    %41 = tpu.assume_multiple %40, 8 : i32
    %42 = arith.index_cast %41 : i32 to index
    %c0_37 = arith.constant 0 : index
    %43 = vector.load %arg7[%42, %c0_37] : memref<8x9xf32, #tpu.memory_space<vmem>>, vector<8x9xf32>
    %c0_38 = arith.constant 0 : index
    %c0_39 = arith.constant 0 : index
    %44 = vector.load %arg12[%c0_38, %c0_39] : memref<32x9xf32, #tpu.memory_space<vmem>>, vector<32x9xf32>
    %cst_40 = arith.constant dense<0.000000e+00> : vector<32x8xf32>
    %45 = tpu.matmul %44, %43, %cst_40 {dimension_numbers = #tpu.dot_dimension_numbers<[1], [1], [0], [0], [0, 0, 1, 0], [], []>} : vector<32x9xf32>, vector<8x9xf32>, vector<32x8xf32> -> vector<32x8xf32>
    %46 = tpu.iota {dimensions = array<i32: 0>} : vector<32x8xi32>
    %c8_i32_41 = arith.constant 8 : i32
    %c0_i32_42 = arith.constant 0 : i32
    %47 = arith.cmpi eq, %c8_i32_41, %c0_i32_42 : i32
    %c1_i32_43 = arith.constant 1 : i32
    %48 = arith.select %47, %c1_i32_43, %c8_i32_41 : i32
    %49 = vector.broadcast %48 : i32 to vector<32x8xi32>
    %50 = arith.remsi %46, %49 : vector<32x8xi32>
    %c0_i32_44 = arith.constant 0 : i32
    %51 = vector.broadcast %c0_i32_44 : i32 to vector<32x8xi32>
    %52 = arith.cmpi ne, %50, %51 : vector<32x8xi32>
    %c0_i32_45 = arith.constant 0 : i32
    %53 = vector.broadcast %c0_i32_45 : i32 to vector<32x8xi32>
    %54 = arith.cmpi slt, %50, %53 : vector<32x8xi32>
    %c0_i32_46 = arith.constant 0 : i32
    %55 = arith.cmpi slt, %48, %c0_i32_46 : i32
    %56 = vector.broadcast %55 : i1 to vector<32x8xi1>
    %57 = vector.broadcast %56 : vector<32x8xi1> to vector<32x8xi1>
    %58 = arith.xori %54, %57 : vector<32x8xi1>
    %59 = arith.andi %58, %52 : vector<32x8xi1>
    %60 = vector.broadcast %48 : i32 to vector<32x8xi32>
    %61 = arith.addi %50, %60 : vector<32x8xi32>
    %62 = arith.select %59, %61, %50 : vector<32x8xi1>, vector<32x8xi32>
    %63 = tpu.iota {dimensions = array<i32: 1>} : vector<32x8xi32>
    %64 = arith.cmpi sgt, %63, %62 : vector<32x8xi32>
    %cst_47 = arith.constant -1.000000e+30 : f32
    %65 = vector.broadcast %cst_47 : f32 to vector<32x8xf32>
    %66 = arith.select %64, %65, %45 : vector<32x8xi1>, vector<32x8xf32>
    %c0_48 = arith.constant 0 : index
    %c0_49 = arith.constant 0 : index
    %67 = vector.load %arg13[%c0_48, %c0_49] : memref<32x1xf32, #tpu.memory_space<vmem>>, vector<32x1xf32>
    %cst_50 = arith.constant dense<0xFF800000> : vector<32xf32>
    %68 = vector.multi_reduction <maximumf>, %66, %cst_50 [1] : vector<32x8xf32> to vector<32xf32>
    %69 = vector.shape_cast %68 : vector<32xf32> to vector<32x1xf32>
    %70 = arith.maximumf %67, %69 : vector<32x1xf32>
    %71 = arith.subf %67, %70 : vector<32x1xf32>
    %72 = math.exp %71 : vector<32x1xf32>
    %73 = vector.broadcast %70 : vector<32x1xf32> to vector<32x8xf32>
    %74 = arith.subf %66, %73 : vector<32x8xf32>
    %75 = math.exp %74 : vector<32x8xf32>
    %c0_51 = arith.constant 0 : index
    %c0_52 = arith.constant 0 : index
    %76 = vector.load %arg14[%c0_51, %c0_52] : memref<32x1xf32, #tpu.memory_space<vmem>>, vector<32x1xf32>
    %77 = arith.mulf %72, %76 : vector<32x1xf32>
    %cst_53 = arith.constant dense<0.000000e+00> : vector<32xf32>
    %78 = vector.multi_reduction <add>, %75, %cst_53 [1] : vector<32x8xf32> to vector<32xf32>
    %79 = vector.shape_cast %78 : vector<32xf32> to vector<32x1xf32>
    %80 = arith.addf %77, %79 : vector<32x1xf32>
    %c0_54 = arith.constant 0 : index
    %c0_55 = arith.constant 0 : index
    %81 = vector.load %arg14[%c0_54, %c0_55] : memref<32x1xf32, #tpu.memory_space<vmem>>, vector<32x1xf32>
    tpu.vector_store %arg14[%c0_54, %c0_55], %80 {strides = array<i32>} : memref<32x1xf32, #tpu.memory_space<vmem>>, vector<32x1xf32>,
    %c0_56 = arith.constant 0 : index
    %c0_57 = arith.constant 0 : index
    %82 = vector.load %arg13[%c0_56, %c0_57] : memref<32x1xf32, #tpu.memory_space<vmem>>, vector<32x1xf32>
    tpu.vector_store %arg13[%c0_56, %c0_57], %70 {strides = array<i32>} : memref<32x1xf32, #tpu.memory_space<vmem>>, vector<32x1xf32>,
    %83 = arith.index_cast %41 : i32 to index
    %c0_58 = arith.constant 0 : index
    %84 = vector.load %arg11[%83, %c0_58] : memref<8x32xf32, #tpu.memory_space<vmem>>, vector<8x32xf32>
    %85 = vector.extract_strided_slice %72 {offsets = [0, 0], sizes = [8, 1], strides = [1, 1]} : vector<32x1xf32> to vector<8x1xf32>
    %c0_59 = arith.constant 0 : index
    %c0_60 = arith.constant 0 : index
    %86 = vector.load %arg15[%c0_59, %c0_60] : memref<32x8xf32, #tpu.memory_space<vmem>>, vector<8x8xf32>
    %87 = vector.broadcast %85 : vector<8x1xf32> to vector<8x8xf32>
    %88 = arith.mulf %87, %86 : vector<8x8xf32>
    %89 = vector.extract_strided_slice %75 {offsets = [0, 0], sizes = [8, 8], strides = [1, 1]} : vector<32x8xf32> to vector<8x8xf32>
    %90 = vector.extract_strided_slice %84 {offsets = [0, 0], sizes = [8, 8], strides = [1, 1]} : vector<8x32xf32> to vector<8x8xf32>
    %cst_61 = arith.constant dense<0.000000e+00> : vector<8x8xf32>
    %91 = tpu.matmul %89, %90, %cst_61 {dimension_numbers = #tpu.dot_dimension_numbers<[1], [0], [0], [1], [0, 0, 1, 1], [], []>} : vector<8x8xf32>, vector<8x8xf32>, vector<8x8xf32> -> vector<8x8xf32>
    %92 = arith.addf %88, %91 : vector<8x8xf32>
    %c0_62 = arith.constant 0 : index
    %c0_63 = arith.constant 0 : index
    %93 = vector.load %arg15[%c0_62, %c0_63] : memref<32x8xf32, #tpu.memory_space<vmem>>, vector<8x8xf32>
    tpu.vector_store %arg15[%c0_62, %c0_63], %92 {strides = array<i32>} : memref<32x8xf32, #tpu.memory_space<vmem>>, vector<8x8xf32>,
    %94 = vector.extract_strided_slice %72 {offsets = [8, 0], sizes = [8, 1], strides = [1, 1]} : vector<32x1xf32> to vector<8x1xf32>
    %c8_64 = arith.constant 8 : index
    %c0_65 = arith.constant 0 : index
    %95 = vector.load %arg15[%c8_64, %c0_65] : memref<32x8xf32, #tpu.memory_space<vmem>>, vector<8x8xf32>
    %96 = vector.broadcast %94 : vector<8x1xf32> to vector<8x8xf32>
    %97 = arith.mulf %96, %95 : vector<8x8xf32>
    %98 = vector.extract_strided_slice %75 {offsets = [8, 0], sizes = [8, 8], strides = [1, 1]} : vector<32x8xf32> to vector<8x8xf32>
    %99 = vector.extract_strided_slice %84 {offsets = [0, 8], sizes = [8, 8], strides = [1, 1]} : vector<8x32xf32> to vector<8x8xf32>
    %cst_66 = arith.constant dense<0.000000e+00> : vector<8x8xf32>
    %100 = tpu.matmul %98, %99, %cst_66 {dimension_numbers = #tpu.dot_dimension_numbers<[1], [0], [0], [1], [0, 0, 1, 1], [], []>} : vector<8x8xf32>, vector<8x8xf32>, vector<8x8xf32> -> vector<8x8xf32>
    %101 = arith.addf %97, %100 : vector<8x8xf32>
    %c8_67 = arith.constant 8 : index
    %c0_68 = arith.constant 0 : index
    %102 = vector.load %arg15[%c8_67, %c0_68] : memref<32x8xf32, #tpu.memory_space<vmem>>, vector<8x8xf32>
    tpu.vector_store %arg15[%c8_67, %c0_68], %101 {strides = array<i32>} : memref<32x8xf32, #tpu.memory_space<vmem>>, vector<8x8xf32>,
    %103 = vector.extract_strided_slice %72 {offsets = [16, 0], sizes = [8, 1], strides = [1, 1]} : vector<32x1xf32> to vector<8x1xf32>
    %c16_69 = arith.constant 16 : index
    %c0_70 = arith.constant 0 : index
    %104 = vector.load %arg15[%c16_69, %c0_70] : memref<32x8xf32, #tpu.memory_space<vmem>>, vector<8x8xf32>
    %105 = vector.broadcast %103 : vector<8x1xf32> to vector<8x8xf32>
    %106 = arith.mulf %105, %104 : vector<8x8xf32>
    %107 = vector.extract_strided_slice %75 {offsets = [16, 0], sizes = [8, 8], strides = [1, 1]} : vector<32x8xf32> to vector<8x8xf32>
    %108 = vector.extract_strided_slice %84 {offsets = [0, 16], sizes = [8, 8], strides = [1, 1]} : vector<8x32xf32> to vector<8x8xf32>
    %cst_71 = arith.constant dense<0.000000e+00> : vector<8x8xf32>
    %109 = tpu.matmul %107, %108, %cst_71 {dimension_numbers = #tpu.dot_dimension_numbers<[1], [0], [0], [1], [0, 0, 1, 1], [], []>} : vector<8x8xf32>, vector<8x8xf32>, vector<8x8xf32> -> vector<8x8xf32>
    %110 = arith.addf %106, %109 : vector<8x8xf32>
    %c16_72 = arith.constant 16 : index
    %c0_73 = arith.constant 0 : index
    %111 = vector.load %arg15[%c16_72, %c0_73] : memref<32x8xf32, #tpu.memory_space<vmem>>, vector<8x8xf32>
    tpu.vector_store %arg15[%c16_72, %c0_73], %110 {strides = array<i32>} : memref<32x8xf32, #tpu.memory_space<vmem>>, vector<8x8xf32>,
    %112 = vector.extract_strided_slice %72 {offsets = [24, 0], sizes = [8, 1], strides = [1, 1]} : vector<32x1xf32> to vector<8x1xf32>
    %c24_74 = arith.constant 24 : index
    %c0_75 = arith.constant 0 : index
    %113 = vector.load %arg15[%c24_74, %c0_75] : memref<32x8xf32, #tpu.memory_space<vmem>>, vector<8x8xf32>
    %114 = vector.broadcast %112 : vector<8x1xf32> to vector<8x8xf32>
    %115 = arith.mulf %114, %113 : vector<8x8xf32>
    %116 = vector.extract_strided_slice %75 {offsets = [24, 0], sizes = [8, 8], strides = [1, 1]} : vector<32x8xf32> to vector<8x8xf32>
    %117 = vector.extract_strided_slice %84 {offsets = [0, 24], sizes = [8, 8], strides = [1, 1]} : vector<8x32xf32> to vector<8x8xf32>
    %cst_76 = arith.constant dense<0.000000e+00> : vector<8x8xf32>
    %118 = tpu.matmul %116, %117, %cst_76 {dimension_numbers = #tpu.dot_dimension_numbers<[1], [0], [0], [1], [0, 0, 1, 1], [], []>} : vector<8x8xf32>, vector<8x8xf32>, vector<8x8xf32> -> vector<8x8xf32>
    %119 = arith.addf %115, %118 : vector<8x8xf32>
    %c24_77 = arith.constant 24 : index
    %c0_78 = arith.constant 0 : index
    %120 = vector.load %arg15[%c24_77, %c0_78] : memref<32x8xf32, #tpu.memory_space<vmem>>, vector<8x8xf32>
    tpu.vector_store %arg15[%c24_77, %c0_78], %119 {strides = array<i32>} : memref<32x8xf32, #tpu.memory_space<vmem>>, vector<8x8xf32>,
    %c0_79 = arith.constant 0 : index
    %c0_80 = arith.constant 0 : index
    %121 = vector.load %arg15[%c0_79, %c0_80] : memref<32x8xf32, #tpu.memory_space<vmem>>, vector<32x8xf32>
    %c0_81 = arith.constant 0 : index
    %c0_82 = arith.constant 0 : index
    %122 = vector.load %arg14[%c0_81, %c0_82] : memref<32x1xf32, #tpu.memory_space<vmem>>, vector<32x1xf32>
    %123 = tpu.reciprocal %122 {approx = true} : vector<32x1xf32> -> vector<32x1xf32>
    %124 = vector.broadcast %123 : vector<32x1xf32> to vector<32x8xf32>
    %125 = arith.mulf %121, %124 : vector<32x8xf32>
    %126 = vector.extract_strided_slice %125 {offsets = [0, 0], sizes = [8, 8], strides = [1, 1]} : vector<32x8xf32> to vector<8x8xf32>
    %c0_83 = arith.constant 0 : index
    %c0_84 = arith.constant 0 : index
    %127 = vector.load %arg16[%c0_83, %c0_84] : memref<8x32xf32, #tpu.memory_space<vmem>>, vector<8x8xf32>
    tpu.vector_store %arg16[%c0_83, %c0_84], %126 {strides = array<i32>} : memref<8x32xf32, #tpu.memory_space<vmem>>, vector<8x8xf32>,
    %128 = vector.extract_strided_slice %125 {offsets = [8, 0], sizes = [8, 8], strides = [1, 1]} : vector<32x8xf32> to vector<8x8xf32>
    %c0_85 = arith.constant 0 : index
    %c8_86 = arith.constant 8 : index
    %129 = vector.load %arg16[%c0_85, %c8_86] : memref<8x32xf32, #tpu.memory_space<vmem>>, vector<8x8xf32>
    tpu.vector_store %arg16[%c0_85, %c8_86], %128 {strides = array<i32>} : memref<8x32xf32, #tpu.memory_space<vmem>>, vector<8x8xf32>,
    %130 = vector.extract_strided_slice %125 {offsets = [16, 0], sizes = [8, 8], strides = [1, 1]} : vector<32x8xf32> to vector<8x8xf32>
    %c0_87 = arith.constant 0 : index
    %c16_88 = arith.constant 16 : index
    %131 = vector.load %arg16[%c0_87, %c16_88] : memref<8x32xf32, #tpu.memory_space<vmem>>, vector<8x8xf32>
    tpu.vector_store %arg16[%c0_87, %c16_88], %130 {strides = array<i32>} : memref<8x32xf32, #tpu.memory_space<vmem>>, vector<8x8xf32>,
    %132 = vector.extract_strided_slice %125 {offsets = [24, 0], sizes = [8, 8], strides = [1, 1]} : vector<32x8xf32> to vector<8x8xf32>
    %c0_89 = arith.constant 0 : index
    %c24_90 = arith.constant 24 : index
    %133 = vector.load %arg16[%c0_89, %c24_90] : memref<8x32xf32, #tpu.memory_space<vmem>>, vector<8x8xf32>
    tpu.vector_store %arg16[%c0_89, %c24_90], %132 {strides = array<i32>} : memref<8x32xf32, #tpu.memory_space<vmem>>, vector<8x8xf32>,
    %c0_91 = arith.constant 0 : index
    %c0_92 = arith.constant 0 : index
    %134 = vector.load %arg16[%c0_91, %c0_92] : memref<8x32xf32, #tpu.memory_space<vmem>>, vector<8x32xf32>
    %c0_93 = arith.constant 0 : index
    %c0_94 = arith.constant 0 : index
    %135 = vector.load %arg8[%c0_93, %c0_94] : memref<32x32xf32, #tpu.memory_space<vmem>>, vector<32x32xf32>
    %cst_95 = arith.constant dense<0.000000e+00> : vector<8x32xf32>
    %136 = tpu.matmul %134, %135, %cst_95 {dimension_numbers = #tpu.dot_dimension_numbers<[1], [0], [0], [1], [0, 0, 1, 1], [], []>} : vector<8x32xf32>, vector<32x32xf32>, vector<8x32xf32> -> vector<8x32xf32>
    %c0_96 = arith.constant 0 : index
    %c0_97 = arith.constant 0 : index
    %137 = vector.load %arg9[%c0_96, %c0_97] : memref<1x32xf32, #tpu.memory_space<vmem>>, vector<1x32xf32>
    %138 = vector.broadcast %137 : vector<1x32xf32> to vector<8x32xf32>
    %139 = arith.addf %136, %138 : vector<8x32xf32>
    %c0_98 = arith.constant 0 : index
    %c0_99 = arith.constant 0 : index
    %c0_100 = arith.constant 0 : index
    %140 = vector.load %arg10[%c0_98, %c0_99, %c0_100] : memref<1x8x32xf32, #tpu.memory_space<vmem>>, vector<1x8x32xf32>
    %141 = vector.shape_cast %140 : vector<1x8x32xf32> to vector<8x32xf32>
    %142 = vector.shape_cast %139 : vector<8x32xf32> to vector<1x8x32xf32>
    tpu.vector_store %arg10[%c0_98, %c0_99, %c0_100], %142 {strides = array<i32>} : memref<1x8x32xf32, #tpu.memory_space<vmem>>, vector<1x8x32xf32>,
    return
  }
  func.func @transform_0(%arg0: i32, %arg1: i32) -> (i32, i32, i32) {
    %c0_i32 = arith.constant 0 : i32
    %c0_i32_0 = arith.constant 0 : i32
    return %arg0, %arg1, %c0_i32 : i32, i32, i32
  }
  func.func @transform_1(%arg0: i32, %arg1: i32) -> (i32, i32) {
    %c0_i32 = arith.constant 0 : i32
    %c0_i32_0 = arith.constant 0 : i32
    %c0_i32_1 = arith.constant 0 : i32
    return %c0_i32, %c0_i32_0 : i32, i32
  }
  func.func @transform_2(%arg0: i32, %arg1: i32) -> (i32, i32) {
    %c0_i32 = arith.constant 0 : i32
    %c0_i32_0 = arith.constant 0 : i32
    %c0_i32_1 = arith.constant 0 : i32
    return %c0_i32, %c0_i32_0 : i32, i32
  }
  func.func @transform_3(%arg0: i32, %arg1: i32) -> (i32, i32) {
    %c0_i32 = arith.constant 0 : i32
    %c0_i32_0 = arith.constant 0 : i32
    %c0_i32_1 = arith.constant 0 : i32
    return %c0_i32, %c0_i32_0 : i32, i32
  }
  func.func @transform_4(%arg0: i32, %arg1: i32) -> (i32, i32) {
    %c0_i32 = arith.constant 0 : i32
    %c0_i32_0 = arith.constant 0 : i32
    %c0_i32_1 = arith.constant 0 : i32
    return %c0_i32, %c0_i32_0 : i32, i32
  }
  func.func @transform_5(%arg0: i32, %arg1: i32) -> (i32, i32) {
    %c0_i32 = arith.constant 0 : i32
    %c0_i32_0 = arith.constant 0 : i32
    %c0_i32_1 = arith.constant 0 : i32
    return %c0_i32, %c0_i32_0 : i32, i32
  }
  func.func @transform_6(%arg0: i32, %arg1: i32) -> (i32, i32) {
    %c0_i32 = arith.constant 0 : i32
    %c0_i32_0 = arith.constant 0 : i32
    %c0_i32_1 = arith.constant 0 : i32
    return %c0_i32, %c0_i32_0 : i32, i32
  }
  func.func @transform_7(%arg0: i32, %arg1: i32) -> (i32, i32) {
    %c0_i32 = arith.constant 0 : i32
    %c0_i32_0 = arith.constant 0 : i32
    %c0_i32_1 = arith.constant 0 : i32
    return %c0_i32, %c0_i32_0 : i32, i32
  }
  func.func @transform_8(%arg0: i32, %arg1: i32) -> (i32, i32, i32) {
    %c0_i32 = arith.constant 0 : i32
    %c0_i32_0 = arith.constant 0 : i32
    return %arg0, %arg1, %c0_i32 : i32, i32, i32
  }
}

</mosaic_0001>

<bundles_post_ra>
// kernel: tpu_custom_call.1
= control target key start
LH: loop header
LB: loop body
LE: loop exit
PB: predicated region body
PF: predicated region fallthrough
CT: control target
= control target key end

     0   :  { %s3005_s0 = inlined_call_operand.hbm [shape: f32[2,8,32], index: 0, kind: input, shape index: {}]   ;;  %s3006_s1 = inlined_call_operand.hbm [shape: f32[32,32], index: 1, kind: input, shape index: {}]   ;;  %s3007_s2 = inlined_call_operand.vmem [shape: f32[1,32], index: 2, kind: input, shape index: {}]   ;;  %s3008_s3 = inlined_call_operand.hbm [shape: f32[32,32], index: 3, kind: input, shape index: {}]   ;;  %s3009_s4 = inlined_call_operand.vmem [shape: f32[1,32], index: 4, kind: input, shape index: {}]   ;;  %s3010_s5 = inlined_call_operand.vmem [shape: f32[8,9], index: 5, kind: input, shape index: {}]   ;;  %s3011_s6 = inlined_call_operand.hbm [shape: f32[32,32], index: 6, kind: input, shape index: {}]   ;;  %s3012_s7 = inlined_call_operand.vmem [shape: f32[1,32], index: 7, kind: input, shape index: {}]   ;;  %s3013_s8 = inlined_call_operand.hbm [shape: f32[2,8,32], index: 8, kind: output, shape index: {}]  }
   0x1   :  { %3021 = sst [smem:[#allocation24_spill]] %s3012_s7 }
   0x2   :  { %3022 = sst [smem:[#allocation25_spill]] %s3013_s8 }
   0x3   :  { %13 = vsyncpa [#allocation9], 0 }
   0x4   :  { %15 = vsyncpa [#allocation9 + $0x1], 0 }
   0x5   :  { %16 = vsyncpa [#allocation12], 0 }
   0x6   :  { %17 = vsyncpa [#allocation15], 0 }
   0x7   :  { %18 = vsyncpa [#allocation10], 0 }
   0x8   :  { %20 = vsyncpa [#allocation10 + $0x1], 0  ;;  %s2575_s27 = smov 0   ;;  %s2577_s28 = smov 0  }
   0x9   :  { %s2579_s29 = smov 0   ;;  %s2581_s30 = smov 0  }
   0xa   :  { %s2583_s9 = smov 0   ;;  %s2585_s10 = smov 0  }
   0xb LB: > { %3023 = sst [smem:[#allocation21_spill]] %s2489_s27  ;;  %s2019_s11 = sadd.s32 4294967295, %s2509_s10   ;;  %s2509_s10 = sphi %s2585_s10, %s26_s10   ;;  %s2505_s9 = sphi %s2583_s9, %s3050_s9   ;;  %s2501_s30 = sphi %s2581_s30, %s3049_s30   ;;  %s2497_s29 = sphi %s2579_s29, %s3048_s29   ;;  %s2493_s28 = sphi %s2577_s28, %s3047_s28   ;;  %s2489_s27 = sphi %s2575_s27, %s3046_s27  }
   0xc   : > { %3024 = sst [smem:[#allocation22_spill]] %s2501_s30  ;;  %s2020_s12 = sadd.s32 4294967294, %s2509_s10  }
   0xd   : > { %p60_p0 = scmp.ne.s32.totalorder %s2493_s28, %s2489_s27  ;;  %p2609_p1 = scmp.eq.s32.totalorder %s2019_s11, 0 }
   0xe   : > { %p2613_p2 = scmp.eq.s32.totalorder %s2019_s11, 1  ;;  %p239_p3 = scmp.eq.s32.totalorder %s2020_s12, 1 }
   0xf   : > { %s3025_s13 = scalar_select %p2609_p1, 1, 0 }
  0x10   : > { %s3026_s14 = scalar_select %p2613_p2, 1, 0 }
  0x11   : > { %p2619_p4 = por %p2609_p1, %p60_p0  ;;  %p2021_p5 = scmp.ge.s32.totalorder %s2509_s10, 1 }
  0x12   : > { %p2624_p6 = por %p239_p3, %p60_p0  ;;  %p246_p7 = scmp.lt.s32.totalorder %s2509_s10, 3 }
  0x13   : > { %s3027_s15 = scalar_select %p2619_p4, 1, 0 }
  0x14   : > { %s3028_s16 = scalar_select %p2624_p6, 1, 0 }
  0x15   : > { %p2629_p8 = pnand %p2021_p5, %p246_p7  ;;  %s2511_s18 = smov [#allocation11]  }
  0x16   : > { %3029 = sst [smem:[#allocation23_spill]] %s3028_s16  ;;  %s258_s19 = sshll.u32 %s2511_s18, 4  ;;  %s2633_s19 = int_to_ptr.vmem [resolvable:$true] %s258_s19 }
  0x17   : > { %s3030_s17 = scalar_select %p2629_p8, 1, 0 }
  0x18   : > { %p2188_p9 = pneg %p2629_p8  ;;  %s2512_s21 = smov [#allocation13]  }
  0x19   : > { %s274_s22 = sshll.u32 %s2512_s21, 4  ;;  %s2513_s23 = smov [#allocation14]   ;;  %s2644_s22 = int_to_ptr.vmem [resolvable:$true] %s274_s22 }
  0x1a   : > { %p2640_p11 = pnand %p2188_p9, %p2609_p1  ;;  %s2646_s24 = sshll.u32 %s2513_s23, 4  ;;  %s294_s24 = int_to_ptr.vmem [resolvable:$true] %s2646_s24 }
  0x1b   : > { %s2305_s11 = scalar_lea.hbm %s3006_s1, 512 }
  0x1c   : > { %p2306_p12 = scmp.ne.s32.totalorder %s3006_s1, %s2305_s11  ;;  %p2656_p13 = pneg %p2640_p11 }
  0x1d   : > { %p2312_p5 = scmp.lt.u32.totalorder %s2305_s11, %s3006_s1 }
  0x1e   : > { %p2308_p0 = pnand %p2656_p13, %p2306_p12 }
  0x20   : > { %p2309_p3 = pneg %p2308_p0 }
  0x22   : > { %p2314_p7 = pnand %p2312_p5, %p2309_p3 }
  0x24   : > { %2317 = shalt.err (!%p2314_p7)
}
  0x25   : > { %s2318_s25 = scalar_lea.vmem %s2633_s19, 512  ;;  %p2326_p1 = scmp.lt.s32.totalorder %s2633_s19, %s2633_s19 }
  0x26   : > { %p2319_p9 = scmp.ne.s32.totalorder %s2633_s19, %s2318_s25  ;;  %p2327_p4 = scmp.lt.s32.totalorder %s2318_s25, %s2318_s25 }
  0x28   : > { %p2321_p10 = pnand %p2319_p9, %p2656_p13  ;;  %p2328_p12 = por %p2327_p4, %p2326_p1 }
  0x2a   : > { %p2322_p6 = pneg %p2321_p10 }
  0x2c   : > { %p2329_p0 = pnand %p2328_p12, %p2322_p6 }
  0x2e   : > { %2332 = shalt.err (!%p2329_p0)
}
  0x2f   : > { %s2514_s26 = smov 128   ;;  %s2515_s11 = smov 8  }
  0x30   : > { %2191 = dma.hbm_to_vmem [thread:$0]  (!%p2640_p11), %s3006_s1, 512, %s2633_s19, [#allocation12], %s2514_s26, %s2514_s26, %s2515_s11  }
  0x31   : > { %s2333_s25 = scalar_lea.hbm %s3008_s3, 512 }
  0x32   : > { %p2334_p1 = scmp.ne.s32.totalorder %s3008_s3, %s2333_s25  ;;  %p2340_p10 = scmp.lt.u32.totalorder %s2333_s25, %s3008_s3 }
  0x34   : > { %p2336_p4 = pnand %p2334_p1, %p2656_p13 }
  0x36   : > { %p2337_p6 = pneg %p2336_p4 }
  0x38   : > { %p2342_p3 = pnand %p2340_p10, %p2337_p6 }
  0x3a   : > { %2345 = shalt.err (!%p2342_p3)
}
  0x3b   : > { %s2346_s19 = scalar_lea.vmem %s2644_s22, 512  ;;  %p2354_p12 = scmp.lt.s32.totalorder %s2644_s22, %s2644_s22 }
  0x3c   : > { %p2347_p5 = scmp.ne.s32.totalorder %s2644_s22, %s2346_s19  ;;  %p2355_p0 = scmp.lt.s32.totalorder %s2346_s19, %s2346_s19 }
  0x3e   : > { %p2349_p7 = pnand %p2347_p5, %p2656_p13  ;;  %p2356_p1 = por %p2355_p0, %p2354_p12 }
  0x40   : > { %p2350_p9 = pneg %p2349_p7 }
  0x42   : > { %p2357_p4 = pnand %p2356_p1, %p2350_p9 }
  0x44   : > { %2360 = shalt.err (!%p2357_p4)
}
  0x45   : > { %2194 = dma.hbm_to_vmem [thread:$0]  (!%p2640_p11), %s3008_s3, 512, %s2644_s22, [#allocation12], %s2514_s26, %s2514_s26, %s2515_s11  }
  0x46   : > { %s2361_s12 = scalar_lea.hbm %s3011_s6, 512 }
  0x47   : > { %p2362_p6 = scmp.ne.s32.totalorder %s3011_s6, %s2361_s12  ;;  %p2368_p5 = scmp.lt.u32.totalorder %s2361_s12, %s3011_s6 }
  0x49   : > { %p2364_p10 = pnand %p2362_p6, %p2656_p13 }
  0x4b   : > { %p2365_p3 = pneg %p2364_p10 }
  0x4d   : > { %p2370_p7 = pnand %p2368_p5, %p2365_p3 }
  0x4f   : > { %2373 = shalt.err (!%p2370_p7)
}
  0x50   : > { %s2374_s19 = scalar_lea.vmem %s294_s24, 512  ;;  %p2382_p1 = scmp.lt.s32.totalorder %s294_s24, %s294_s24 }
  0x51   : > { %p2375_p9 = scmp.ne.s32.totalorder %s294_s24, %s2374_s19  ;;  %p2383_p4 = scmp.lt.s32.totalorder %s2374_s19, %s2374_s19 }
  0x53   : > { %p2377_p12 = pnand %p2375_p9, %p2656_p13  ;;  %p2384_p8 = por %p2383_p4, %p2382_p1 }
  0x55   : > { %p2378_p0 = pneg %p2377_p12 }
  0x57   : > { %p2385_p2 = pnand %p2384_p8, %p2378_p0 }
  0x59   : > { %2388 = shalt.err (!%p2385_p2)
}
  0x5a   : > { %2197 = dma.hbm_to_vmem [thread:$0]  (!%p2640_p11), %s3011_s6, 512, %s294_s24, [#allocation15], %s2514_s26, %s2514_s26, %s2515_s11  }
  0x5b   : > { %s47_s16 = sadd.s32 1, %s2497_s29  ;;  %s38_s20 = sadd.s32 1, %s2505_s9 }
  0x5c   : > { %p54_p2 = scmp.ne.s32.totalorder %s2497_s29, %s2493_s28  ;;  %p40_p8 = scmp.ge.s32.totalorder %s38_s20, 2 }
  0x5d   : > { %p55_p13 = scmp.eq.s32.totalorder %s2509_s10, 0  ;;  %p3033_p6 = scmp.ne.s32.totalorder %s3026_s14, 0 }
  0x5e   : > { %p2209_p3 = scmp.lt.s32.totalorder %s2509_s10, 2  ;;  %s3052_s20 = smov (%p40_p8, %s38_s20), 0 }
  0x5f   : > { %p2735_p10 = por %p3033_p6, %p54_p2  ;;  %p56_p5 = por %p55_p13, %p54_p2 }
  0x60   : > { %s310_s27 = sand.u32 1, %s2497_s29   ;;  %s42_s30 = ssub.s32 %s2505_s9, %s3052_s20 }
  0x61   : > { %p45_p7 = scmp.eq.s32.totalorder %s42_s30, 0  ;;  %s2026_s24 = sshll.u32 %s310_s27, 3 }
  0x62   : > { %s2027_s26 = sshll.u32 %s2505_s9, 7  ;;  %s314_s21 = scalar_lea.vmem [#allocation8], %s2026_s24 }
  0x63   : > { %s2747_s11 = scalar_select %p45_p7, %s2497_s29, %s47_s16  }
  0x64   : > { %s2752_s14 = scalar_lea.hbm %s3005_s0, %s2027_s26  ;;  %s322_s23 = sshll.u32 %s314_s21, 4  ;;  %s2754_s23 = int_to_ptr.vmem [resolvable:$true] %s322_s23 }
  0x65   : > { %p2758_p11 = pnand %p2209_p3, %p56_p5  ;;  %s311_s19 = scalar_lea.sflag [#allocation9], %s310_s27 }
  0x66   : > { %s2389_s22 = scalar_lea.hbm %s2752_s14, 128  ;;  %s2394_s30 = scalar_lea.hbm %s3005_s0, 256 }
  0x67   : > { %p2390_p9 = scmp.ne.s32.totalorder %s2752_s14, %s2389_s22  ;;  %p2391_p12 = pneg %p2758_p11 }
  0x68   : > { %p2395_p4 = scmp.lt.u32.totalorder %s2752_s14, %s3005_s0  ;;  %p2396_p2 = scmp.lt.u32.totalorder %s2394_s30, %s2389_s22 }
  0x69   : > { %p2392_p0 = pnand %p2391_p12, %p2390_p9  ;;  %p2398_p13 = scmp.lt.u32.totalorder %s2389_s22, %s2752_s14 }
  0x6a   : > { %p2397_p8 = por %p2396_p2, %p2395_p4 }
  0x6b   : > { %p2393_p1 = pneg %p2392_p0 }
  0x6c   : > { %p2399_p6 = por %p2398_p13, %p2397_p8 }
  0x6e   : > { %p2400_p3 = pnand %p2399_p6, %p2393_p1 }
  0x70   : > { %2403 = shalt.err (!%p2400_p3)
}
  0x71   : > { %s2404_s27 = scalar_lea.vmem %s2754_s23, 128  ;;  %s2516_s12 = smov [#allocation8]  }
  0x72   : > { %p2405_p5 = scmp.ne.s32.totalorder %s2754_s23, %s2404_s27  ;;  %s2409_s18 = sshll.u32 %s2516_s12, 4  ;;  %s2410_s18 = int_to_ptr.vmem [resolvable:$false] %s2409_s18 }
  0x73   : > { %s2411_s21 = scalar_lea.vmem %s2410_s18, 256  ;;  %p2412_p0 = scmp.lt.s32.totalorder %s2754_s23, %s2410_s18 }
  0x74   : > { %p2407_p7 = pnand %p2405_p5, %p2391_p12  ;;  %p2413_p4 = scmp.lt.s32.totalorder %s2411_s21, %s2404_s27 }
  0x76   : > { %p2408_p9 = pneg %p2407_p7  ;;  %p2414_p2 = por %p2413_p4, %p2412_p0 }
  0x78   : > { %p2415_p8 = pnand %p2414_p2, %p2408_p9 }
  0x7a   : > { %2418 = shalt.err (!%p2415_p8)
}
  0x7b   : > { %2201 = dma.hbm_to_vmem [thread:$0]  (!%p2758_p11), %s2752_s14, 128, %s2754_s23, %s311_s19  }
  0x7c   : > { %p3036_p1 = scmp.ne.s32.totalorder %s3030_s17, 0 }
  0x7d   : > { %s2790_s22 = sand.u32 (!%p3036_p1), 1, %s2493_s28   ;;  %p3037_p12 = scmp.ne.s32.totalorder (!%p3036_p1), %s3027_s15, 0 }
  0x7e   : > { %331 = sbr.rel (%p3036_p1) target bundleno = 1646 (0x66e), region = 52  ;;  %s2029_s7 = sshll.u32 (!%p3036_p1), %s2790_s22, 3 }
  0x7f   : > { %s334_s16 = scalar_lea.sflag (!%p3036_p1), [#allocation9], %s2790_s22  ;;  %s337_s30 = scalar_lea.vmem (!%p3036_p1), [#allocation8], %s2029_s7 }
  0x85   : > { %2472 = dma.done.wait (%p3037_p12), %s334_s16, 128  }
  0x86   : > { %2474 = vsyncadd (%p3037_p12), %s334_s16, 4294967168  ;;  %p3038_p11 = scmp.ne.s32.totalorder %s3025_s13, 0 }
  0x88   : > { %2476 = dma.done.wait (%p3038_p11), [#allocation12], 1024  }
  0x89   : > { %2478 = vsyncadd (%p3038_p11), [#allocation12], 4294966272 }
  0x8a   : > { %2480 = dma.done.wait (%p3038_p11), [#allocation15], 512  }
  0x8b   : > { %2482 = vsyncadd (%p3038_p11), [#allocation15], 4294966784  ;;  %v2517_v0 = vmov 0.0|0.0   ;;  %vm2518_vm0 = vmmov 0   ;;  %v2519_v1 = vmov 0.0   ;;  %v471_v2 = vld [vmem:[#allocation11] sm:$0xff]  ;;  %v1243_v35 = vlaneseq }
  0x8c   : > { %2158 = vmatprep.subr.bf16.mxu1 %v2517_v0  ;;  %2110 = vmatprep.mubr.msk.f32.mxu1 %vm2518_vm0, %v2519_v1  ;;  %v472_v3 = vld [vmem:[#allocation11 + $0x8] sm:$0xff]  ;;  %v473_v4 = vld [vmem:[#allocation11 + $0x10] sm:$0xff]  ;;  %v474_v6 = vld [vmem:[#allocation11 + $0x18] sm:$0xff]  ;;  %vm394_vm1 = vcmask 261120   ;;  %vm553_vm2 = vcmask 64512   ;;  %vm1142_vm3 = vcmask 72704  }
  0x8d   : > { %2152 = vmatprep.subr.bf16.mxu0 %v2517_v0  ;;  %2099 = vmatprep.mubr.msk.f32.mxu0 %vm2518_vm0, %v2519_v1  ;;  %v2159_v5 = vpack.c.bf16 %v472_v3, %v471_v2  ;;  %v2162_v7 = vpack.c.bf16 %v474_v6, %v473_v4  ;;  %v382_v8 = vld [vmem:[%s337_s30] sm:$0xff]  ;;  %582 = vst.msk [vmem:[#allocation6] sm:$0xff] %vm553_vm2, %v2519_v1  ;;  %583 = vst.msk [vmem:[#allocation6 + $0x8] sm:$0xff] %vm553_vm2, %v2519_v1  ;;  %v383_v9 = vld [vmem:[#allocation13] sm:$0xff]  ;;  %vm568_vm4 = vcmask 72768   ;;  %s2520_s23 = smov 104  }
  0x8e   : > { %584 = vst.msk [vmem:[#allocation6 + $0x10] sm:$0xff] %vm553_vm2, %v2519_v1  ;;  %585 = vst.msk [vmem:[#allocation6 + $0x18] sm:$0xff] %vm553_vm2, %v2519_v1  ;;  %v384_v10 = vld [vmem:[#allocation13 + $0x8] sm:$0xff]  ;;  %v385_v11 = vld [vmem:[#allocation13 + $0x10] sm:$0xff]  ;;  %s2521_s25 = smov 120   ;;  %v2522_v21 = vmov 1.0  }
  0x8f   : > { %2160 = vmatpush3.bf16.msra.mxu1 %v2159_v5  ;;  %v2153_v12 = vpack.c.bf16 %v384_v10, %v383_v9  ;;  %v386_v13 = vld [vmem:[#allocation13 + $0x18] sm:$0xff]  ;;  %v1137_v15 = vld [vmem:[%s3010_s5] sm:$0xff]  ;;  %s2523_s19 = smov 112   ;;  %vm573_vm5 = vcmask 7168   ;;  %v2524_v34 = vmov -1e+30  }
  0x90   : > { %2161 = vmatprep.subr.bf16.mxu1 %v2517_v0  ;;  %v2156_v14 = vpack.c.bf16 %v386_v13, %v385_v11  ;;  %v2036_v16 = vld [vmem:[%s3007_s2] ss:$0 sm:$0xff]  ;;  %575 = vst.msk [vmem:[#allocation4 + $0x8] sm:$0xff] %vm573_vm5, %v2524_v34  ;;  %574 = vst.msk [vmem:[#allocation4] sm:$0xff] %vm573_vm5, %v2524_v34  ;;  %v1244_v36 = vshrl.u32 %v1243_v35, 7  ;;  %v1297_v39 = vand.u32 127, %v1243_v35 }
  0x91   : > { %2154 = vmatpush3.bf16.msra.mxu0 %v2153_v12  ;;  %v2034_v23 = vld [vmem:[%s3009_s4] ss:$0 sm:$0xff]  ;;  %576 = vst.msk [vmem:[#allocation4 + $0x10] sm:$0xff] %vm573_vm5, %v2524_v34  ;;  %577 = vst.msk [vmem:[#allocation4 + $0x18] sm:$0xff] %vm573_vm5, %v2524_v34  ;;  %v2525_v57 = vmov 0   ;;  %s2526_s27 = smov 8  }
  0x92   : > { %2155 = vmatprep.subr.bf16.mxu0 %v2517_v0  ;;  %578 = vst.msk [vmem:[#allocation5] sm:$0xff] %vm573_vm5, %v2519_v1  ;;  %579 = vst.msk [vmem:[#allocation5 + $0x8] sm:$0xff] %vm573_vm5, %v2519_v1  ;;  %v1245_v37 = vadd.s32 8, %v1244_v36  ;;  %v1252_v40 = vand.u32 7, %v1244_v36  ;;  %v1247_v41 = vadd.s32 24, %v1244_v36  ;;  %v1246_v42 = vadd.s32 16, %v1244_v36  ;;  %2280 = vset.pattern.permute.xlu1 %v2525_v57 }
  0x93   : > { %2163 = vmatpush3.bf16.msra.mxu1 %v2162_v7  ;;  %580 = vst.msk [vmem:[#allocation5 + $0x10] sm:$0xff] %vm573_vm5, %v2519_v1  ;;  %581 = vst.msk [vmem:[#allocation5 + $0x18] sm:$0xff] %vm573_vm5, %v2519_v1  ;;  %2279 = vset.pattern.permute.xlu0 %v2525_v57  ;;  %s2527_s12 = smov 16   ;;  %s2528_s18 = smov 24   ;;  %vm1782_vm10 = vcmask 130112   ;;  %vm1788_vm11 = vcmask 195712  }
  0x94   : > { %2170 = vmatprep.subr.msk.mxu1 %vm1142_vm3, %v1137_v15  ;;  %v1259_v38 = vand.u32 7, %v1245_v37  ;;  %vm1298_vm7 = vcmp.gt.s32.totalorder %v1297_v39, %v1252_v40  ;;  %v1273_v43 = vand.u32 7, %v1247_v41  ;;  %v1266_v45 = vand.u32 7, %v1246_v42  ;;  %s3039_s21 = sld [smem:[#allocation22_spill]]  ;;  %s3040_s13 = sld [smem:[#allocation24_spill]] }
  0x95   : > { %2157 = vmatpush3.bf16.msra.mxu0 %v2156_v14  ;;  %vm1794_vm12 = vcmask 261312   ;;  %s381_s17 = scalar_lea.vmem [#allocation16], %s2029_s7  ;;  %s1883_s26 = scalar_lea.sflag [#allocation10], %s2790_s22 }
  0x96   : > { %2111 = vmatmul.mubr.msk.f32.vlgmr.msra.gmra.mrb[0].mxu1 %vm394_vm1, %v382_v8  ;;  %2113 = vmatprep.subr.msk.mxu0 %vm1142_vm3, %v1137_v15  ;;  %vm1299_vm6 = vcmp.gt.s32.totalorder %v1297_v39, %v1259_v38  ;;  %vm1301_vm8 = vcmp.gt.s32.totalorder %v1297_v39, %v1273_v43  ;;  %vm1300_vm9 = vcmp.gt.s32.totalorder %v1297_v39, %v1266_v45  ;;  %s1897_s14 = sshll.u32 %s381_s17, 4  ;;  %s2529_s7 = smov [#allocation16]   ;;  %s2957_s14 = int_to_ptr.vmem [resolvable:$true] %s1897_s14 }
  0x97   : > { %v2881_v58 = vld [vmem:[#allocation4 + $0x8] sm:$0xff]  ;;  %v2883_v59 = vld [vmem:[#allocation4] sm:$0xff] }
  0x98   : > { %2100 = vmatmul.mubr.msk.f32.vlgmr.msra.gmra.mrb[0].mxu0 %vm394_vm1, %v382_v8  ;;  %v2896_v3 = vld [vmem:[#allocation4 + $0x18] sm:$0xff]  ;;  %v1308_v5 = vld [vmem:[#allocation4 + $0x10] sm:$0xff] }
  0x99   : > { %v1371_v41 = vld [vmem:[#allocation5 + $0x8] sm:$0xff] }
  0x9a   : > { %v1372_v45 = vld [vmem:[#allocation5 + $0x10] sm:$0xff]  ;;  %s2060_s15 = sshll.u32 %s3039_s21, 7 }
  0x9c   : > { %2171 = vmatpush3.xpose.msk.msra.mxu1 %vm1142_vm3, %v1137_v15 }
  0x9d   : > { %2121 = vmatprep.subr.mxu1 %v2519_v1 }
  0x9e   : > { %2114 = vmatpush3.xpose.msk.msra.mxu0 %vm1142_vm3, %v1137_v15 }
  0x9f   : > { %2131 = vmatprep.subr.mxu0 %v2519_v1 }
 0x169   : > { %v548_v17 = vpop.f32.mrb[0].mxu1 }
 0x16a   : > { %v549_v18 = vadd.f32 %v2036_v16, %v548_v17  ;;  %v2112_v19 = vpop.f32.mrb[1].mxu1 }
 0x16b   : > { %v464_v24 = vpop.f32.mrb[0].mxu0 }
 0x16c   : > { %v552_v20 = vmax.f32 %v549_v18, 0.0  ;;  %v465_v25 = vadd.f32 %v2034_v23, %v464_v24  ;;  %v2101_v26 = vpop.f32.mrb[1].mxu0 }
 0x16e   : > { %554 = vst.msk [vmem:[#allocation3] sm:$0xff] %vm553_vm2, %v552_v20  ;;  %564 = vrot.lane.b32.xlu1 %v552_v20, %s2520_s23  ;;  %556 = vrot.lane.b32.xlu0 %v552_v20, %s2521_s25 }
 0x16f   : > { %569 = vst.msk [vmem:[#allocation3] sm:$0xff] %vm568_vm4, %v2522_v21 }
 0x170   : > { %470 = vst.msk [vmem:[#allocation2] sm:$0xff] %vm394_vm1, %v465_v25 }
 0x172   : > { %560 = vrot.lane.b32.xlu0 %v552_v20, %s2523_s19 }
 0x176   : > { %v1138_v22 = vld [vmem:[#allocation3] sm:$0xff] }
 0x177   : > { %2115 = vmatprep.mubr.msk.f32.mxu0 %vm1142_vm3, %v1138_v22  ;;  %v2861_v33 = vld [vmem:[#allocation2] sm:$0xff] }
 0x1e0   : > { %v565_v27 = vpop.permute.xlu1 %564  ;;  %v557_v28 = vpop.permute.xlu0 %556 }
 0x1e1   : > { %567 = vst.msk [vmem:[#allocation3 + $0x18] sm:$0xff] %vm553_vm2, %v565_v27  ;;  %559 = vst.msk [vmem:[#allocation3 + $0x8] sm:$0xff] %vm553_vm2, %v557_v28 }
 0x1e2   : > { %572 = vst.msk [vmem:[#allocation3 + $0x18] sm:$0xff] %vm568_vm4, %v2522_v21  ;;  %570 = vst.msk [vmem:[#allocation3 + $0x8] sm:$0xff] %vm568_vm4, %v2522_v21 }
 0x1e4   : > { %v561_v29 = vpop.permute.xlu0 %560 }
 0x1e5   : > { %563 = vst.msk [vmem:[#allocation3 + $0x10] sm:$0xff] %vm553_vm2, %v561_v29 }
 0x1e6   : > { %571 = vst.msk [vmem:[#allocation3 + $0x10] sm:$0xff] %vm568_vm4, %v2522_v21 }
 0x1e9   : > { %v1139_v30 = vld [vmem:[#allocation3 + $0x8] sm:$0xff]  ;;  %v1141_v31 = vld [vmem:[#allocation3 + $0x18] sm:$0xff] }
 0x1ea   : > { %2116 = vmatmul.mubr.msk.f32.vlgmr.msra.gmra.mrb[2].mxu0 %vm1142_vm3, %v1139_v30 }
 0x1eb   : > { %2133 = vmatprep.mubr.msk.f32.mxu0 %vm2518_vm0, %v2519_v1 }
 0x1ed   : > { %v1140_v32 = vld [vmem:[#allocation3 + $0x10] sm:$0xff] }
 0x1ee   : > { %2118 = vmatprep.mubr.msk.f32.mxu1 %vm1142_vm3, %v1140_v32 }
 0x1ef   : > { %2119 = vmatmul.mubr.msk.f32.vlgmr.msra.gmra.mrb[2].mxu1 %vm1142_vm3, %v1141_v31 }
 0x1f0   : > { %2123 = vmatprep.mubr.msk.f32.mxu1 %vm2518_vm0, %v2519_v1  ;;  %2122 = vmatpush3.msra.mxu1 %v2861_v33 }
 0x1f1   : > { %2126 = vmatprep.subr.mxu1 %v2519_v1 }
 0x2bd   : > { %v2117_v44 = vpop.f32.mrb[2].mxu0 }
 0x2be   : > { %v1303_v46 = vsel %vm1299_vm6, -1e+30, %v2117_v44  ;;  %v1224_v47 = vpop.f32.mrb[3].mxu0 }
 0x2bf   : > { %v1302_v48 = vsel %vm1298_vm7, -1e+30, %v1224_v47  ;;  %v1313_v49 = vsel %vm553_vm2, %v1303_v46, -inf }
 0x2c0   : > { %1314 = vmax.xlane.f32.xlu0 %v1313_v49  ;;  %v1310_v50 = vsel %vm553_vm2, %v1302_v48, -inf  ;;  %v1370_v49 = vld [vmem:[#allocation5] sm:$0xff] }
 0x2c1   : > { %1311 = vmax.xlane.f32.xlu1 %v1310_v50  ;;  %v1373_v50 = vld [vmem:[#allocation5 + $0x18] sm:$0xff] }
 0x2c2   : > { %v2120_v51 = vpop.f32.mrb[2].mxu1 }
 0x2c3   : > { %v1305_v52 = vsel %vm1301_vm8, -1e+30, %v2120_v51  ;;  %v1234_v53 = vpop.f32.mrb[3].mxu1 }
 0x2c4   : > { %v1304_v54 = vsel %vm1300_vm9, -1e+30, %v1234_v53  ;;  %v1319_v55 = vsel %vm553_vm2, %v1305_v52, -inf }
 0x2c5   : > { %1320 = vmax.xlane.f32.xlu1 %v1319_v55  ;;  %v1316_v56 = vsel %vm553_vm2, %v1304_v54, -inf }
 0x2c6   : > { %1317 = vmax.xlane.f32.xlu0 %v1316_v56 }
 0x34d   : > { %v1315_v60 = vpop.xlane.xlu0 %1314 }
 0x34e   : > { %v2886_v61 = vmax.f32 %v2881_v58, %v1315_v60  ;;  %v1312_v62 = vpop.xlane.xlu1 %1311 }
 0x34f   : > { %v2889_v63 = vmax.f32 %v2883_v59, %v1312_v62 }
 0x350   : > { %v1327_v2 = vsub.f32 %v2881_v58, %v2886_v61  ;;  %1399 = vst.msk [vmem:[#allocation4 + $0x8] sm:$0xff] %vm573_vm5, %v2886_v61  ;;  %1345 = vperm.xlu1 %2280, %v2886_v61  }
 0x351   : > { %v1326_v4 = vsub.f32 %v2883_v59, %v2889_v63  ;;  %1398 = vst.msk [vmem:[#allocation4] sm:$0xff] %vm573_vm5, %v2889_v63  ;;  %1340 = vperm.xlu0 %2279, %v2889_v63  }
 0x352   : > { %v1321_v6 = vpop.xlane.xlu1 %1320  ;;  %v1332_v35 = vmul.f32 1.442695, %v1327_v2 }
 0x353   : > { %v1325_v7 = vmax.f32 %v2896_v3, %v1321_v6  ;;  %v1318_v8 = vpop.xlane.xlu0 %1317  ;;  %v1330_v40 = vmul.f32 1.442695, %v1326_v4 }
 0x354   : > { %v1324_v9 = vmax.f32 %v1308_v5, %v1318_v8 }
 0x355   : > { %v1329_v10 = vsub.f32 %v2896_v3, %v1325_v7  ;;  %1401 = vst.msk [vmem:[#allocation4 + $0x18] sm:$0xff] %vm573_vm5, %v1325_v7 }
 0x356   : > { %v1328_v11 = vsub.f32 %v1308_v5, %v1324_v9  ;;  %1400 = vst.msk [vmem:[#allocation4 + $0x10] sm:$0xff] %vm573_vm5, %v1324_v9  ;;  %1350 = vperm.xlu1 %2280, %v1324_v9   ;;  %v1485_v5 = vld [vmem:[#allocation6 + $0x8] sm:$0xff] }
 0x357   : > { %v1336_v36 = vmul.f32 1.442695, %v1329_v10 }
 0x358   : > { %v1334_v37 = vmul.f32 1.442695, %v1328_v11 }
 0x35a   : > { %1355 = vperm.xlu1 %2280, %v1325_v7   ;;  %v1571_v7 = vld [vmem:[#allocation6 + $0x10] sm:$0xff] }
 0x35e   : > { %1493 = vrot.lane.b32.xlu1 %v2861_v33, %s2521_s25 }
 0x362   : > { %1578 = vrot.lane.b32.xlu1 %v2861_v33, %s2523_s19  ;;  %s3041_s19 = sld [smem:[#allocation25_spill]] }
 0x366   : > { %1663 = vrot.lane.b32.xlu1 %v2861_v33, %s2520_s23 }
 0x368   : > { %s2955_s24 = scalar_lea.hbm %s3041_s19, %s2060_s15 }
 0x3cf   : > { %v1346_v12 = vpop.permute.xlu1 %1345 }
 0x3d0   : > { %v1359_v13 = vsub.f32 %v1303_v46, %v1346_v12  ;;  %v1341_v14 = vpop.permute.xlu0 %1340 }
 0x3d1   : > { %v1358_v15 = vsub.f32 %v1302_v48, %v1341_v14  ;;  %v1656_v14 = vld [vmem:[#allocation6 + $0x18] sm:$0xff] }
 0x3d2   : > { %v1364_v16 = vmul.f32 1.442695, %v1359_v13 }
 0x3d3   : > { %v1362_v17 = vmul.f32 1.442695, %v1358_v15 }
 0x3d4   : > { %2281 = vpow2.f32 %v1364_v16 }
 0x3d5   : > { %2283 = vpow2.f32 %v1362_v17  ;;  %v1351_v18 = vpop.permute.xlu1 %1350 }
 0x3d6   : > { %v1360_v19 = vsub.f32 %v1304_v54, %v1351_v18 }
 0x3d8   : > { %v1366_v20 = vmul.f32 1.442695, %v1360_v19 }
 0x3d9   : > { %v1356_v21 = vpop.permute.xlu1 %1355 }
 0x3da   : > { %2285 = vpow2.f32 %v1366_v20  ;;  %v1361_v22 = vsub.f32 %v1305_v52, %v1356_v21 }
 0x3dc   : > { %v1368_v23 = vmul.f32 1.442695, %v1361_v22 }
 0x3dd   : > { %v1494_v24 = vpop.permute.xlu1 %1493 }
 0x3de   : > { %v2282_v25 = vpop.eup %2281  ;;  %2287 = vpow2.f32 %v1368_v23 }
 0x3df   : > { %v2284_v26 = vpop.eup %2283  ;;  %v1381_v27 = vsel %vm553_vm2, %v2282_v25, 0.0  ;;  %2289 = vpow2.f32 %v1332_v35 }
 0x3e0   : > { %2124 = vmatmul.mubr.msk.f32.vlgmr.msra.gmra.mrb[4].mxu1 %vm553_vm2, %v2284_v26  ;;  %1382 = vadd.xlane.f32.xlu1 %v1381_v27  ;;  %v1378_v33 = vsel %vm553_vm2, %v2284_v26, 0.0  ;;  %2291 = vpow2.f32 %v1336_v36  ;;  %v1403_v36 = vld [vmem:[#allocation6] sm:$0xff] }
 0x3e1   : > { %2127 = vmatpush3.msra.mxu1 %v1494_v24  ;;  %v1579_v28 = vpop.permute.xlu1 %1578  ;;  %2128 = vmatprep.mubr.msk.f32.mxu1 %vm2518_vm0, %v2519_v1  ;;  %2293 = vpow2.f32 %v1334_v37  ;;  %v1797_v24 = vld [vmem:[#allocation14] sm:$0xff] }
 0x3e2   : > { %2132 = vmatpush3.msra.mxu0 %v1579_v28  ;;  %2136 = vmatprep.subr.mxu1 %v2519_v1  ;;  %2295 = vpow2.f32 %v1330_v40 }
 0x3e3   : > { %2164 = vmatprep.subr.bf16.mxu0 %v2517_v0 }
 0x3e4   : > { %v2286_v29 = vpop.eup %2285  ;;  %2129 = vmatmul.mubr.msk.f32.vlgmr.msra.gmra.mrb[6].mxu1 %vm553_vm2, %v2282_v25  ;;  %v1798_v25 = vld [vmem:[#allocation14 + $0x8] sm:$0xff] }
 0x3e5   : > { %2134 = vmatmul.mubr.msk.f32.vlgmr.msra.gmra.mrb[4].mxu0 %vm553_vm2, %v2286_v29  ;;  %v1664_v30 = vpop.permute.xlu1 %1663  ;;  %v1384_v31 = vsel %vm553_vm2, %v2286_v29, 0.0  ;;  %2138 = vmatprep.mubr.msk.f32.mxu1 %vm2518_vm0, %v2519_v1  ;;  %v2165_v28 = vpack.c.bf16 %v1798_v25, %v1797_v24  ;;  %v1799_v29 = vld [vmem:[#allocation14 + $0x10] sm:$0xff] }
 0x3e6   : > { %1385 = vadd.xlane.f32.xlu0 %v1384_v31  ;;  %2137 = vmatpush3.msra.mxu1 %v1664_v30  ;;  %v1800_v30 = vld [vmem:[#allocation14 + $0x18] sm:$0xff] }
 0x3e7   : > { %2149 = vmatprep.mubr.msk.f32.mxu0 %vm2518_vm0, %v2519_v1  ;;  %2166 = vmatpush3.bf16.msra.mxu0 %v2165_v28 }
 0x3e8   : > { %v2288_v32 = vpop.eup %2287  ;;  %2167 = vmatprep.subr.bf16.mxu0 %v2517_v0 }
 0x3e9   : > { %2139 = vmatmul.mubr.msk.f32.vlgmr.msra.gmra.mrb[8].mxu1 %vm553_vm2, %v2288_v32  ;;  %v1387_v34 = vsel %vm553_vm2, %v2288_v32, 0.0  ;;  %v2290_v38 = vpop.eup %2289  ;;  %v2168_v32 = vpack.c.bf16 %v1800_v30, %v1799_v29 }
 0x3ea   : > { %1379 = vadd.xlane.f32.xlu0 %v1378_v33  ;;  %1388 = vadd.xlane.f32.xlu1 %v1387_v34  ;;  %v2292_v1 = vpop.eup %2291  ;;  %v1375_v42 = vmul.f32 %v2290_v38, %v1371_v41 }
 0x3eb   : > { %v2294_v39 = vpop.eup %2293  ;;  %v1377_v53 = vmul.f32 %v2292_v1, %v1373_v50  ;;  %2169 = vmatpush3.bf16.msra.mxu0 %v2168_v32 }
 0x3ec   : > { %v1376_v46 = vmul.f32 %v2294_v39, %v1372_v45  ;;  %v2296_v47 = vpop.eup %2295 }
 0x3ed   : > { %v1374_v52 = vmul.f32 %v2296_v47, %v1370_v49 }
 0x3fb   : > { %1488 = vperm.xlu1 %2280, %v2290_v38  }
 0x3ff   : > { %1659 = vperm.xlu1 %2280, %v2292_v1  }
 0x400   : > { %1574 = vperm.xlu0 %2279, %v2294_v39  }
 0x46d   : > { %v1383_v43 = vpop.xlane.xlu1 %1382 }
 0x46e   : > { %v1391_v44 = vadd.f32 %v1383_v43, %v1375_v42 }
 0x470   : > { %1395 = vst.msk [vmem:[#allocation5 + $0x8] sm:$0xff] %vm573_vm5, %v1391_v44 }
 0x473   : > { %v1386_v48 = vpop.xlane.xlu0 %1385 }
 0x474   : > { %v1392_v51 = vadd.f32 %v1386_v48, %v1376_v46  ;;  %v2057_v48 = vld [vmem:[%s3040_s13] ss:$0 sm:$0xff] }
 0x476   : > { %1396 = vst.msk [vmem:[#allocation5 + $0x10] sm:$0xff] %vm573_vm5, %v1392_v51 }
 0x477   : > { %v1380_v54 = vpop.xlane.xlu0 %1379  ;;  %v1389_v55 = vpop.xlane.xlu1 %1388  ;;  %v1746_v56 = vld [vmem:[#allocation5 + $0x8] sm:$0xff] }
 0x478   : > { %v1390_v57 = vadd.f32 %v1380_v54, %v1374_v52  ;;  %v1393_v58 = vadd.f32 %v1389_v55, %v1377_v53  ;;  %2297 = vrcp.f32 %v1746_v56 }
 0x47a   : > { %1394 = vst.msk [vmem:[#allocation5] sm:$0xff] %vm573_vm5, %v1390_v57  ;;  %1397 = vst.msk [vmem:[#allocation5 + $0x18] sm:$0xff] %vm573_vm5, %v1393_v58 }
 0x47b   : > { %v1489_v4 = vpop.permute.xlu1 %1488 }
 0x47c   : > { %v1491_v10 = vmul.f32 %v1489_v4, %v1485_v5 }
 0x47d   : > { %v1747_v59 = vld [vmem:[#allocation5 + $0x10] sm:$0xff] }
 0x47e   : > { %2299 = vrcp.f32 %v1747_v59 }
 0x47f   : > { %v1575_v8 = vpop.permute.xlu0 %1574  ;;  %v1660_v12 = vpop.permute.xlu1 %1659 }
 0x480   : > { %v1577_v11 = vmul.f32 %v1575_v8, %v1571_v7  ;;  %v1662_v20 = vmul.f32 %v1660_v12, %v1656_v14 }
 0x481   : > { %v1748_v60 = vld [vmem:[#allocation5 + $0x18] sm:$0xff]  ;;  %v1745_v62 = vld [vmem:[#allocation5] sm:$0xff] }
 0x482   : > { %v2298_v61 = vpop.eup %2297  ;;  %2301 = vrcp.f32 %v1748_v60 }
 0x483   : > { %1760 = vperm.xlu1 %2280, %v2298_v61   ;;  %2303 = vrcp.f32 %v1745_v62 }
 0x488   : > { %v2300_v63 = vpop.eup %2299 }
 0x489   : > { %1765 = vperm.xlu0 %2279, %v2300_v63  }
 0x48c   : > { %v2302_v2 = vpop.eup %2301 }
 0x48d   : > { %1406 = vperm.xlu0 %2279, %v2296_v47   ;;  %1770 = vperm.xlu1 %2280, %v2302_v2   ;;  %v2304_v3 = vpop.eup %2303 }
 0x491   : > { %1755 = vperm.xlu1 %2280, %v2304_v3  }
 0x4b3   : > { %v1479_v6 = vpop.f32.mrb[4].mxu1 }
 0x4b4   : > { %v2125_v9 = vpop.f32.mrb[5].mxu1 }
 0x4b7   : > { %v1565_v13 = vpop.f32.mrb[6].mxu1 }
 0x4b8   : > { %v1569_v15 = vadd.f32 %v1565_v13, %v1491_v10  ;;  %v2130_v16 = vpop.f32.mrb[7].mxu1  ;;  %v1650_v17 = vpop.f32.mrb[4].mxu0 }
 0x4b9   : > { %v1654_v18 = vadd.f32 %v1650_v17, %v1577_v11  ;;  %v2135_v19 = vpop.f32.mrb[5].mxu0 }
 0x4ba   : > { %1570 = vst.msk [vmem:[#allocation6 + $0x8] sm:$0xff] %vm553_vm2, %v1569_v15 }
 0x4bb   : > { %1655 = vst.msk [vmem:[#allocation6 + $0x10] sm:$0xff] %vm553_vm2, %v1654_v18 }
 0x4bc   : > { %v1735_v21 = vpop.f32.mrb[8].mxu1 }
 0x4bd   : > { %v1739_v22 = vadd.f32 %v1735_v21, %v1662_v20  ;;  %v2140_v23 = vpop.f32.mrb[9].mxu1 }
 0x4bf   : > { %1740 = vst.msk [vmem:[#allocation6 + $0x18] sm:$0xff] %vm553_vm2, %v1739_v22 }
 0x4c1   : > { %v1742_v26 = vld [vmem:[#allocation6 + $0x8] sm:$0xff] }
 0x4c2   : > { %v1743_v34 = vld [vmem:[#allocation6 + $0x10] sm:$0xff] }
 0x4c6   : > { %v1744_v38 = vld [vmem:[#allocation6 + $0x18] sm:$0xff] }
 0x502   : > { %v1761_v27 = vpop.permute.xlu1 %1760 }
 0x503   : > { %v1774_v31 = vmul.f32 %v1761_v27, %v1742_v26 }
 0x505   : > { %1779 = vrot.lane.b32.xlu0 %v1774_v31, %s2526_s27  ;;  %s2419_s27 = scalar_lea.vmem %s2957_s14, 128 }
 0x506   : > { %p2420_p13 = scmp.ne.s32.totalorder %s2957_s14, %s2419_s27 }
 0x508   : > { %v1766_v33 = vpop.permute.xlu0 %1765  ;;  %p2421_p6 = pnand %p2420_p13, %p2735_p10 }
 0x509   : > { %v1775_v35 = vmul.f32 %v1766_v33, %v1743_v34 }
 0x50a   : > { %p2422_p3 = pneg %p2421_p6 }
 0x50b   : > { %1785 = vrot.lane.b32.xlu1 %v1775_v35, %s2527_s12  ;;  %s2423_s12 = sshll.u32 %s2529_s7, 4  ;;  %s2424_s12 = int_to_ptr.vmem [resolvable:$false] %s2423_s12 }
 0x50c   : > { %v1407_v37 = vpop.permute.xlu0 %1406  ;;  %v1771_v1 = vpop.permute.xlu1 %1770  ;;  %p2426_p5 = scmp.lt.s32.totalorder %s2957_s14, %s2424_s12 }
 0x50d   : > { %v1409_v39 = vmul.f32 %v1407_v37, %v1403_v36  ;;  %v1776_v40 = vmul.f32 %v1771_v1, %v1744_v38 }
 0x50f   : > { %v1483_v41 = vadd.f32 %v1479_v6, %v1409_v39  ;;  %1791 = vrot.lane.b32.xlu0 %v1776_v40, %s2528_s18  ;;  %s2425_s18 = scalar_lea.vmem %s2424_s12, 256 }
 0x510   : > { %v1756_v0 = vpop.permute.xlu1 %1755  ;;  %p2427_p7 = scmp.lt.s32.totalorder %s2425_s18, %s2419_s27 }
 0x511   : > { %1484 = vst.msk [vmem:[#allocation6] sm:$0xff] %vm553_vm2, %v1483_v41 }
 0x512   : > { %p2428_p9 = por %p2427_p7, %p2426_p5 }
 0x514   : > { %p2429_p0 = pnand %p2428_p9, %p2422_p3 }
 0x518   : > { %v1741_v42 = vld [vmem:[#allocation6] sm:$0xff] }
 0x519   : > { %v1773_v43 = vmul.f32 %v1756_v0, %v1741_v42 }
 0x51b   : > { %1777 = vst.msk [vmem:[#allocation7] sm:$0xff] %vm553_vm2, %v1773_v43 }
 0x577   : > { %v1780_v44 = vpop.permute.xlu0 %1779 }
 0x578   : > { %1783 = vst.msk [vmem:[#allocation7] sm:$0xff] %vm1782_vm10, %v1780_v44 }
 0x57d   : > { %v1786_v45 = vpop.permute.xlu1 %1785 }
 0x57e   : > { %1789 = vst.msk [vmem:[#allocation7] sm:$0xff] %vm1788_vm11, %v1786_v45 }
 0x581   : > { %v1792_v46 = vpop.permute.xlu0 %1791 }
 0x582   : > { %1795 = vst.msk [vmem:[#allocation7] sm:$0xff] %vm1794_vm12, %v1792_v46 }
 0x589   : > { %v1796_v47 = vld [vmem:[#allocation7] sm:$0xff] }
 0x58a   : > { %2150 = vmatmul.mubr.msk.f32.vlgmr.msra.gmra.mrb[6].mxu0 %vm394_vm1, %v1796_v47 }
 0x65d   : > { %v1877_v49 = vpop.f32.mrb[6].mxu0 }
 0x65e   : > { %v1878_v50 = vadd.f32 %v2057_v48, %v1877_v49  ;;  %v2151_v51 = vpop.f32.mrb[7].mxu0 }
 0x660   : > { %1881 = vst.msk [vmem:[%s381_s17] sm:$0xff] %vm394_vm1, %v1878_v50 }
 0x661   : > { %2432 = shalt.err (!%p2429_p0)
}
 0x662   : > { %s2433_s22 = scalar_lea.hbm %s2955_s24, 128  ;;  %s2437_s30 = scalar_lea.hbm %s3041_s19, 256 }
 0x663   : > { %p2434_p4 = scmp.ne.s32.totalorder %s2955_s24, %s2433_s22  ;;  %p2438_p1 = scmp.lt.u32.totalorder %s2955_s24, %s3041_s19 }
 0x664   : > { %p2439_p12 = scmp.lt.u32.totalorder %s2437_s30, %s2433_s22  ;;  %p2441_p13 = scmp.lt.u32.totalorder %s2433_s22, %s2955_s24 }
 0x665   : > { %p2435_p2 = pnand %p2434_p4, %p2735_p10 }
 0x666   : > { %p2440_p11 = por %p2439_p12, %p2438_p1 }
 0x667   : > { %p2436_p8 = pneg %p2435_p2 }
 0x668   : > { %p2442_p6 = por %p2441_p13, %p2440_p11 }
 0x66a   : > { %p2443_p3 = pnand %p2442_p6, %p2436_p8 }
 0x66c   : > { %2446 = shalt.err (!%p2443_p3)
}
 0x66d   : > { %2186 = dma.vmem_to_hbm [thread:$0]  (%p2735_p10), %s2957_s14, 128, %s2955_s24, %s1883_s26  }
 0x66e PF: > { %s3042_s17 = sld [smem:[#allocation21_spill]]  ;;  %s3043_s23 = sld [smem:[#allocation23_spill]] }
 0x66f   : > { %p3045_p7 = scmp.ge.s32.totalorder %s2509_s10, 2 }
 0x674   : > { %s1909_s25 = sand.u32 1, %s3042_s17   ;;  %p3044_p5 = scmp.ne.s32.totalorder %s3043_s23, 0 }
 0x675   : > { %s1910_s27 = scalar_lea.sflag [#allocation10], %s1909_s25 }
 0x676   : > { %p2203_p9 = pnand %p3045_p7, %p3044_p5 }
 0x678   : > { %2484 = dma.done.wait (!%p2203_p9), %s1910_s27, 128  }
 0x679   : > { %2486 = vsyncadd (!%p2203_p9), %s1910_s27, 4294967168  ;;  %s26_s10 = sadd.s32 1, %s2509_s10   ;;  %s3046_s27 = smov %s2493_s28 }
 0x67a   : > { %p23_p0 = scmp.ge.s32.totalorder %s26_s10, 4   ;;  %s3047_s28 = smov %s2497_s29 }
 0x67b   : > { %s3048_s29 = smov %s2747_s11  ;;  %s3049_s30 = smov %s2505_s9 }
 0x67c   : > { %s3050_s9 = smov %s3052_s20  ;;  %25 = sbr.rel (!%p23_p0) target bundleno = 11 (0xb), region = 131 }
 0x683   :  { %1915 = vsyncpa [#allocation9], 1 }
 0x684   :  { %1917 = vsyncpa [#allocation9 + $0x1], 1 }
 0x685   :  { %1918 = vsyncpa [#allocation12], 1 }
 0x686   :  { %1919 = vsyncpa [#allocation15], 1 }
 0x687   :  { %1920 = vsyncpa [#allocation10], 1 }
 0x688   :  { %1922 = vsyncpa [#allocation10 + $0x1], 1 }

</bundles_post_ra>
